<compile_context>
chip_gen: v7x
topology: tpu7x:2x2x1
jax: 0.10.0
libtpu: 0.0.40
codegen_flags: <defaults>
</compile_context>

<pallas_src>
import math

import jax
import jax.numpy as jnp
from jax.experimental import pallas as pl
from jax.experimental.pallas import tpu as pltpu

# ------------------------- configuration (small shapes) -------------------------
B         = 2     # batch
N_BIOS    = 16    # bio vocab size (d_args['n_bios'])
D_BIO     = 16    # d_args['bio_dim']  (transformer hidden)
PF_DIM    = 32    # d_args['pf_dim']   (FFN filter dim)
N_HEADS   = 2     # d_args['n_heads']
N_LAYERS  = 2     # d_args['n_layers']
BIO_OUT   = 8     # d_args['bio_out']
OUT_DIM   = 32    # backend.out_dim
N_CLASSES = 2     # args['nb_classes']
L_BIO     = 8     # bio sequence length
WAVE_LEN  = 64    # synthetic waveform length
FRAME     = 16    # synthetic backend frame size
T_SSL     = WAVE_LEN // FRAME
IS_ADD    = True  # args['is_add']
LN_EPS    = 1e-5
DH        = D_BIO // N_HEADS
LANE      = 128

# per-layer packed bias/gamma/beta rows (one vector per zero-padded 128-lane row)
ROW_BQ  = 0                   # H rows, width DH (pre-scaled by 1/sqrt(DH))
ROW_BK  = N_HEADS             # H rows, width DH
ROW_BV  = 2 * N_HEADS         # H rows, width DH
ROW_BO  = 3 * N_HEADS         # width D_BIO
ROW_G1  = 3 * N_HEADS + 1
ROW_BE1 = 3 * N_HEADS + 2
ROW_B1  = 3 * N_HEADS + 3     # width PF_DIM
ROW_B2  = 3 * N_HEADS + 4
ROW_G2  = 3 * N_HEADS + 5
ROW_BE2 = 3 * N_HEADS + 6
LVEC_ROWS = 16                # padded to a multiple of 8 sublanes

# model-level packed rows: 0 bfeat | 1 bsc | 2 bfc1 | 3 bfc2
HVEC_ROWS = 8

# rough static cost estimate (advisory only)
_FLOPS = (
    2 * B * T_SSL * FRAME * OUT_DIM
    + N_LAYERS * (
        2 * B * L_BIO * D_BIO * 3 * D_BIO          # Q/K/V (per-head slabs)
        + 2 * 2 * N_HEADS * B * L_BIO * L_BIO * DH  # scores + AV
        + 2 * B * L_BIO * D_BIO * D_BIO             # Wo (per-head accumulate)
        + 2 * 2 * B * L_BIO * D_BIO * PF_DIM        # FFN
    )
    + 2 * B * L_BIO * D_BIO * BIO_OUT
    + 2 * B * OUT_DIM * BIO_OUT
    + 2 * B * BIO_OUT * N_CLASSES
)
_TRANS = (
    N_LAYERS * (N_HEADS * B * L_BIO * L_BIO + 2 * B * L_BIO)  # softmax exp + LN rsqrt
    + B * N_CLASSES + B                                        # log-softmax
)


# --------------------------------- fused kernel ---------------------------------

def fused_forward_kernel(lens_ref, frames_ref, emb_ref,
                         wfeat_ref, wsc_ref, wfc1_ref, wfc2_ref,
                         wqkv_ref, wo_ref, w1_ref, w2_ref,
                         lvec_ref, hvec_ref,
                         out_ref, ssl_ref, b_ref):
    """Whole Model.forward in one Pallas invocation; everything VMEM-resident."""
    # ---- packed model-level bias rows (row select + offset-0 lane slice) ----
    hv = hvec_ref[...]                                        # (HVEC_ROWS, 128)
    bfeat = hv[0:1, :OUT_DIM]
    bsc   = hv[1:2, :BIO_OUT]
    bfc1  = hv[2:3, :BIO_OUT]
    bfc2  = hv[3:4, :N_CLASSES]

    # ---- backend (synthetic SSL): framed linear projection + mean pool ----
    # TODO(synk): the real wav2vec2 SSL backend is an external pretrained model;
    # approximated here by a framed linear projection + mean pool.
    f = frames_ref[...]                                       # (B, T, FRAME)
    h = jnp.dot(f.reshape(B * T_SSL, FRAME), wfeat_ref[...],
                preferred_element_type=jnp.float32) + bfeat
    ssl = h.reshape(B, T_SSL, OUT_DIM)
    ssl_ref[...] = ssl
    x_back = jnp.mean(ssl, axis=1)                            # (B, OUT_DIM)

    # ---- masks: one vectorized iota-vs-length compare, built once ----
    lens = lens_ref[...]                                      # (B, 1) int32 (VMEM)
    l3 = lens[:, :, None]                                     # (B, 1, 1)
    iota_q = jax.lax.broadcasted_iota(jnp.int32, (B, L_BIO, 1), 1)
    mask3 = (iota_q < l3).astype(jnp.float32)                 # (B, L, 1)
    iq = jax.lax.broadcasted_iota(jnp.int32, (B, L_BIO, L_BIO), 1)
    ik = jax.lax.broadcasted_iota(jnp.int32, (B, L_BIO, L_BIO), 2)
    valid = jnp.logical_and(iq < l3, ik < l3)                 # (B, L, L)
    attn_bias = jnp.where(valid, 0.0, -1e4)                   # additive masked_fill(-1e4)

    def layer_norm(z, g, b):
        mu = jnp.mean(z, axis=-1, keepdims=True)
        var = jnp.mean(jnp.square(z - mu), axis=-1, keepdims=True)
        return (z - mu) * jax.lax.rsqrt(var + LN_EPS) * g + b

    # ---- VITS-style encoder: entry mask, N_LAYERS of (MHA -> LN, FFN -> LN) ----
    x = emb_ref[...] * mask3                                  # (B, L, D)
    for l in range(N_LAYERS):                                 # static unroll, stacked weights
        lv = lvec_ref[l]                                      # (LVEC_ROWS, 128)
        bo  = lv[ROW_BO:ROW_BO + 1, :D_BIO]
        g1  = lv[ROW_G1:ROW_G1 + 1, :D_BIO]
        be1 = lv[ROW_BE1:ROW_BE1 + 1, :D_BIO]
        b1  = lv[ROW_B1:ROW_B1 + 1, :PF_DIM]
        b2  = lv[ROW_B2:ROW_B2 + 1, :D_BIO]
        g2  = lv[ROW_G2:ROW_G2 + 1, :D_BIO]
        be2 = lv[ROW_BE2:ROW_BE2 + 1, :D_BIO]

        x2 = x.reshape(B * L_BIO, D_BIO)                      # leading-dim merge only
        y2 = jnp.zeros((B * L_BIO, D_BIO), jnp.float32)

        # per-head attention: head split lives in the packed weights, head merge
        # is the accumulated per-head Wo matmul -> no lane slices / concats.
        for hh in range(N_HEADS):
            wq_h = wqkv_ref[l * 3 * N_HEADS + hh]             # (D, DH), pre-scaled
            wk_h = wqkv_ref[l * 3 * N_HEADS + N_HEADS + hh]
            wv_h = wqkv_ref[l * 3 * N_HEADS + 2 * N_HEADS + hh]
            bq_h = lv[ROW_BQ + hh:ROW_BQ + hh + 1, :DH]
            bk_h = lv[ROW_BK + hh:ROW_BK + hh + 1, :DH]
            bv_h = lv[ROW_BV + hh:ROW_BV + hh + 1, :DH]

            q_h = (jnp.dot(x2, wq_h, preferred_element_type=jnp.float32)
                   + bq_h).reshape(B, L_BIO, DH)
            k_h = (jnp.dot(x2, wk_h, preferred_element_type=jnp.float32)
                   + bk_h).reshape(B, L_BIO, DH)
            v_h = (jnp.dot(x2, wv_h, preferred_element_type=jnp.float32)
                   + bv_h).reshape(B, L_BIO, DH)

            s = jnp.einsum('bqd,bkd->bqk', q_h, k_h,
                           preferred_element_type=jnp.float32) + attn_bias
            s = s - jnp.max(s, axis=-1, keepdims=True)
            p = jnp.exp(s)
            p = p / jnp.sum(p, axis=-1, keepdims=True)        # exact softmax divide
            o_h = jnp.einsum('bqk,bkd->bqd', p, v_h,
                             preferred_element_type=jnp.float32)  # (B, L, DH)
            y2 = y2 + jnp.dot(o_h.reshape(B * L_BIO, DH),
                              wo_ref[l * N_HEADS + hh],
                              preferred_element_type=jnp.float32)

        y = (y2 + bo).reshape(B, L_BIO, D_BIO)
        x = layer_norm(x + y, g1, be1)

        # FFN (1x1 convs == per-timestep matmuls), masked as in the VITS FFN
        h1 = jnp.dot((x * mask3).reshape(B * L_BIO, D_BIO), w1_ref[l],
                     preferred_element_type=jnp.float32) + b1
        h1 = jnp.maximum(h1, 0.0).reshape(B, L_BIO, PF_DIM)
        h2 = (jnp.dot((h1 * mask3).reshape(B * L_BIO, PF_DIM), w2_ref[l],
                      preferred_element_type=jnp.float32) + b2).reshape(B, L_BIO, D_BIO)
        x = layer_norm(x + h2 * mask3, g2, be2)

    # ---- bio scoring: final encoder mask, 1x1 conv, mask, fixed last timestep ----
    xm = x * mask3                                            # Encoder exit masking
    sc = (jnp.dot(xm.reshape(B * L_BIO, D_BIO), wsc_ref[...],
                  preferred_element_type=jnp.float32) + bsc).reshape(B, L_BIO, BIO_OUT)
    sc = sc * mask3
    bio_scoring = sc[:, L_BIO - 1, :]                         # == PyTorch [:, :, -1] after mask

    # ---- head: fc1(x_back) + bio_scoring, fc2, log_softmax ----
    hfc = jnp.dot(x_back, wfc1_ref[...], preferred_element_type=jnp.float32) + bfc1
    b_emb = hfc + bio_scoring                                 # is_add=True path
    b_ref[...] = b_emb
    logits = jnp.dot(b_emb, wfc2_ref[...], preferred_element_type=jnp.float32) + bfc2
    z = logits - jnp.max(logits, axis=-1, keepdims=True)
    out_ref[...] = z - jnp.log(jnp.sum(jnp.exp(z), axis=-1, keepdims=True))


# ------------------------------ parameters ------------------------------

def init_params(key):
    def nrm(k, shape, scale=0.1):
        return scale * jax.random.normal(k, shape, dtype=jnp.float32)

    keys = iter(jax.random.split(key, 128))
    p = {}
    # nn.Embedding(n_bios, bio_dim), init normal(0, bio_dim**-0.5)
    p['emb'] = jax.random.normal(next(keys), (N_BIOS, D_BIO),
                                 dtype=jnp.float32) * (D_BIO ** -0.5)
    layers = []
    for _ in range(N_LAYERS):
        lp = {
            'wq': nrm(next(keys), (D_BIO, D_BIO)), 'bq': nrm(next(keys), (1, D_BIO)),
            'wk': nrm(next(keys), (D_BIO, D_BIO)), 'bk': nrm(next(keys), (1, D_BIO)),
            'wv': nrm(next(keys), (D_BIO, D_BIO)), 'bv': nrm(next(keys), (1, D_BIO)),
            'wo': nrm(next(keys), (D_BIO, D_BIO)), 'bo': nrm(next(keys), (1, D_BIO)),
            'g1': jnp.ones((1, D_BIO), jnp.float32), 'be1': jnp.zeros((1, D_BIO), jnp.float32),
            'w1': nrm(next(keys), (D_BIO, PF_DIM)),  'b1': nrm(next(keys), (1, PF_DIM)),
            'w2': nrm(next(keys), (PF_DIM, D_BIO)),  'b2': nrm(next(keys), (1, D_BIO)),
            'g2': jnp.ones((1, D_BIO), jnp.float32), 'be2': jnp.zeros((1, D_BIO), jnp.float32),
        }
        layers.append(lp)
    p['layers'] = layers
    # nn.Conv1d(bio_dim, bio_out, 1)
    p['wsc'] = nrm(next(keys), (D_BIO, BIO_OUT)); p['bsc'] = nrm(next(keys), (1, BIO_OUT))
    # synthetic backend projection
    p['wfeat'] = nrm(next(keys), (FRAME, OUT_DIM)); p['bfeat'] = nrm(next(keys), (1, OUT_DIM))
    # fc1 / fc2
    p['wfc1'] = nrm(next(keys), (OUT_DIM, BIO_OUT)); p['bfc1'] = nrm(next(keys), (1, BIO_OUT))
    p['wfc2'] = nrm(next(keys), (BIO_OUT, N_CLASSES)); p['bfc2'] = nrm(next(keys), (1, N_CLASSES))
    return p


def pack_params(p):
    """One-time packing: per-head weight slabs, 128-lane-row bias packs, folded scale."""
    ls = p['layers']
    scale = DH ** -0.5                                        # folded into Q weights/bias

    wqkv_list, wo_list, lvec_list = [], [], []

    def put(rows, idx, vec):
        v = jnp.asarray(vec).reshape(-1)
        return rows.at[idx, :v.shape[0]].set(v)

    for lp in ls:
        # per-head Q (pre-scaled) / K / V column slabs, then per-head Wo row slabs
        for h in range(N_HEADS):
            wqkv_list.append(lp['wq'][:, h * DH:(h + 1) * DH] * scale)
        for h in range(N_HEADS):
            wqkv_list.append(lp['wk'][:, h * DH:(h + 1) * DH])
        for h in range(N_HEADS):
            wqkv_list.append(lp['wv'][:, h * DH:(h + 1) * DH])
        for h in range(N_HEADS):
            wo_list.append(lp['wo'][h * DH:(h + 1) * DH, :])

        rows = jnp.zeros((LVEC_ROWS, LANE), jnp.float32)
        for h in range(N_HEADS):
            rows = put(rows, ROW_BQ + h, lp['bq'][:, h * DH:(h + 1) * DH] * scale)
            rows = put(rows, ROW_BK + h, lp['bk'][:, h * DH:(h + 1) * DH])
            rows = put(rows, ROW_BV + h, lp['bv'][:, h * DH:(h + 1) * DH])
        rows = put(rows, ROW_BO,  lp['bo'])
        rows = put(rows, ROW_G1,  lp['g1'])
        rows = put(rows, ROW_BE1, lp['be1'])
        rows = put(rows, ROW_B1,  lp['b1'])
        rows = put(rows, ROW_B2,  lp['b2'])
        rows = put(rows, ROW_G2,  lp['g2'])
        rows = put(rows, ROW_BE2, lp['be2'])
        lvec_list.append(rows)

    hvec = jnp.zeros((HVEC_ROWS, LANE), jnp.float32)
    hvec = put(hvec, 0, p['bfeat'])
    hvec = put(hvec, 1, p['bsc'])
    hvec = put(hvec, 2, p['bfc1'])
    hvec = put(hvec, 3, p['bfc2'])

    return {
        'emb':  p['emb'],
        'wqkv': jnp.stack(wqkv_list),   # (N_LAYERS*3*H, D, DH)
        'wo':   jnp.stack(wo_list),     # (N_LAYERS*H, DH, D)
        'w1':   jnp.stack([lp['w1'] for lp in ls]),   # (N_LAYERS, D, PF)
        'w2':   jnp.stack([lp['w2'] for lp in ls]),   # (N_LAYERS, PF, D)
        'lvec': jnp.stack(lvec_list),   # (N_LAYERS, 16, 128)
        'hvec': hvec,                   # (8, 128)
        'wsc':  p['wsc'], 'wfeat': p['wfeat'], 'wfc1': p['wfc1'], 'wfc2': p['wfc2'],
    }


# ------------------------------- forward -------------------------------

def model_forward(packed, wave, bio, bio_lengths):
    """Mirrors Model.forward (is_add=True, is_train=True): returns (output, ssl_feat, b)."""
    frames = wave.reshape(B, T_SSL, FRAME)
    # embedding gather kept as glue (tiny); * sqrt(bio_dim) as in the reference
    emb = jnp.take(packed['emb'], bio, axis=0) * math.sqrt(D_BIO)   # (B, L, D)
    lens = bio_lengths.astype(jnp.int32).reshape(B, 1)               # VMEM (B,1) lengths

    out_shapes = (
        jax.ShapeDtypeStruct((B, N_CLASSES), jnp.float32),
        jax.ShapeDtypeStruct((B, T_SSL, OUT_DIM), jnp.float32),
        jax.ShapeDtypeStruct((B, BIO_OUT), jnp.float32),
    )
    args = (lens, frames, emb,
            packed['wfeat'], packed['wsc'], packed['wfc1'], packed['wfc2'],
            packed['wqkv'], packed['wo'], packed['w1'], packed['w2'],
            packed['lvec'], packed['hvec'])

    bytes_accessed = sum(math.prod(a.shape) * jnp.dtype(a.dtype).itemsize
                         for a in list(args) + list(out_shapes))

    output, ssl_feat, b_emb = pl.pallas_call(
        fused_forward_kernel,
        out_shape=out_shapes,
        in_specs=[pl.BlockSpec(memory_space=pltpu.MemorySpace.VMEM)
                  for _ in range(len(args))],
        out_specs=tuple(pl.BlockSpec(memory_space=pltpu.MemorySpace.VMEM)
                        for _ in out_shapes),
        cost_estimate=pl.CostEstimate(flops=_FLOPS, transcendentals=_TRANS,
                                      bytes_accessed=bytes_accessed),
    )(*args)
    return output, ssl_feat, b_emb


# --------------------------------- main ---------------------------------

if __name__ == "__main__":
    key = jax.random.PRNGKey(0)
    k_par, k_wav, k_bio = jax.random.split(key, 3)

    params = init_params(k_par)
    packed = pack_params(params)

    wave = jax.random.normal(k_wav, (B, WAVE_LEN), dtype=jnp.float32)
    # TODO(synk): Wav2bioCNN.wav2bio (external pretrained bio extractor) is not
    # available; bio token ids are synthesized directly.
    bio = jax.random.randint(k_bio, (B, L_BIO), 0, N_BIOS, dtype=jnp.int32)
    bio_lengths = jnp.array([L_BIO, L_BIO - 2], dtype=jnp.int32)

    fwd = jax.jit(model_forward)
    output, ssl_feat, b_emb = fwd(packed, wave, bio, bio_lengths)
    jax.block_until_ready((output, ssl_feat, b_emb))

    assert output.shape == (B, N_CLASSES)
    assert ssl_feat.shape == (B, T_SSL, OUT_DIM)
    assert b_emb.shape == (B, BIO_OUT)
    # log_softmax rows must (log-)sum to ~1
    assert jnp.allclose(jnp.sum(jnp.exp(output), axis=1), 1.0, atol=1e-5)

    print("KERNEL_OK")
</pallas_src>

<mosaic_0001>
module attributes {stable_mosaic.version = 11 : i64} {
  func.func @fused_forward_kernel(%arg0: memref<2x1xi32, #tpu.memory_space<vmem>>, %arg1: memref<2x4x16xf32, #tpu.memory_space<vmem>>, %arg2: memref<2x8x16xf32, #tpu.memory_space<vmem>>, %arg3: memref<16x32xf32, #tpu.memory_space<vmem>>, %arg4: memref<16x8xf32, #tpu.memory_space<vmem>>, %arg5: memref<32x8xf32, #tpu.memory_space<vmem>>, %arg6: memref<8x2xf32, #tpu.memory_space<vmem>>, %arg7: memref<12x16x8xf32, #tpu.memory_space<vmem>>, %arg8: memref<4x8x16xf32, #tpu.memory_space<vmem>>, %arg9: memref<2x16x32xf32, #tpu.memory_space<vmem>>, %arg10: memref<2x32x16xf32, #tpu.memory_space<vmem>>, %arg11: memref<2x16x128xf32, #tpu.memory_space<vmem>>, %arg12: memref<8x128xf32, #tpu.memory_space<vmem>>, %arg13: memref<2x2xf32, #tpu.memory_space<vmem>>, %arg14: memref<2x4x32xf32, #tpu.memory_space<vmem>>, %arg15: memref<2x8xf32, #tpu.memory_space<vmem>>) attributes {dimension_semantics = [], scalar_prefetch = 0 : i64, scratch_operands = 0 : i64, tpu.core_type = #tpu.core_type<tc>} {
    %c0 = arith.constant 0 : index
    %c0_0 = arith.constant 0 : index
    %0 = vector.load %arg12[%c0, %c0_0] : memref<8x128xf32, #tpu.memory_space<vmem>>, vector<8x128xf32>
    %1 = vector.extract_strided_slice %0 {offsets = [0, 0], sizes = [1, 32], strides = [1, 1]} : vector<8x128xf32> to vector<1x32xf32>
    %2 = vector.extract_strided_slice %0 {offsets = [1, 0], sizes = [1, 8], strides = [1, 1]} : vector<8x128xf32> to vector<1x8xf32>
    %3 = vector.extract_strided_slice %0 {offsets = [2, 0], sizes = [1, 8], strides = [1, 1]} : vector<8x128xf32> to vector<1x8xf32>
    %4 = vector.extract_strided_slice %0 {offsets = [3, 0], sizes = [1, 2], strides = [1, 1]} : vector<8x128xf32> to vector<1x2xf32>
    %c0_1 = arith.constant 0 : index
    %c0_2 = arith.constant 0 : index
    %c0_3 = arith.constant 0 : index
    %5 = vector.load %arg1[%c0_1, %c0_2, %c0_3] : memref<2x4x16xf32, #tpu.memory_space<vmem>>, vector<2x4x16xf32>
    %6 = vector.shape_cast %5 : vector<2x4x16xf32> to vector<8x16xf32>
    %c0_4 = arith.constant 0 : index
    %c0_5 = arith.constant 0 : index
    %7 = vector.load %arg3[%c0_4, %c0_5] : memref<16x32xf32, #tpu.memory_space<vmem>>, vector<16x32xf32>
    %cst = arith.constant dense<0.000000e+00> : vector<8x32xf32>
    %8 = tpu.matmul %6, %7, %cst {dimension_numbers = #tpu.dot_dimension_numbers<[1], [0], [0], [1], [0, 0, 1, 1], [], []>} : vector<8x16xf32>, vector<16x32xf32>, vector<8x32xf32> -> vector<8x32xf32>
    %9 = vector.broadcast %1 : vector<1x32xf32> to vector<8x32xf32>
    %10 = arith.addf %8, %9 : vector<8x32xf32>
    %11 = vector.shape_cast %10 : vector<8x32xf32> to vector<2x4x32xf32>
    %c0_6 = arith.constant 0 : index
    %c0_7 = arith.constant 0 : index
    %c0_8 = arith.constant 0 : index
    %12 = vector.load %arg14[%c0_6, %c0_7, %c0_8] : memref<2x4x32xf32, #tpu.memory_space<vmem>>, vector<2x4x32xf32>
    tpu.vector_store %arg14[%c0_6, %c0_7, %c0_8], %11 {strides = array<i32>} : memref<2x4x32xf32, #tpu.memory_space<vmem>>, vector<2x4x32xf32>,
    %cst_9 = arith.constant dense<0.000000e+00> : vector<2x32xf32>
    %13 = vector.multi_reduction <add>, %11, %cst_9 [1] : vector<2x4x32xf32> to vector<2x32xf32>
    %cst_10 = arith.constant 4.000000e+00 : f32
    %14 = vector.broadcast %cst_10 : f32 to vector<2x32xf32>
    %15 = arith.divf %13, %14 : vector<2x32xf32>
    %c0_11 = arith.constant 0 : index
    %c0_12 = arith.constant 0 : index
    %16 = vector.load %arg0[%c0_11, %c0_12] : memref<2x1xi32, #tpu.memory_space<vmem>>, vector<2x1xi32>
    %17 = vector.shape_cast %16 : vector<2x1xi32> to vector<2x1x1xi32>
    %18 = tpu.iota {dimensions = array<i32: 1>} : vector<2x8x1xi32>
    %19 = vector.broadcast %17 : vector<2x1x1xi32> to vector<2x8x1xi32>
    %20 = arith.cmpi slt, %18, %19 : vector<2x8x1xi32>
    %21 = arith.extui %20 : vector<2x8x1xi1> to vector<2x8x1xi32>
    %22 = arith.sitofp %21 : vector<2x8x1xi32> to vector<2x8x1xf32>
    %23 = tpu.iota {dimensions = array<i32: 1>} : vector<2x8x8xi32>
    %24 = tpu.iota {dimensions = array<i32: 2>} : vector<2x8x8xi32>
    %25 = vector.broadcast %17 : vector<2x1x1xi32> to vector<2x8x8xi32>
    %26 = arith.cmpi slt, %23, %25 : vector<2x8x8xi32>
    %27 = vector.broadcast %17 : vector<2x1x1xi32> to vector<2x8x8xi32>
    %28 = arith.cmpi slt, %24, %27 : vector<2x8x8xi32>
    %29 = arith.andi %26, %28 : vector<2x8x8xi1>
    %cst_13 = arith.constant 0.000000e+00 : f32
    %cst_14 = arith.constant -1.000000e+04 : f32
    %30 = vector.broadcast %cst_13 : f32 to vector<2x8x8xf32>
    %31 = vector.broadcast %cst_14 : f32 to vector<2x8x8xf32>
    %32 = arith.select %29, %30, %31 : vector<2x8x8xi1>, vector<2x8x8xf32>
    %c0_15 = arith.constant 0 : index
    %c0_16 = arith.constant 0 : index
    %c0_17 = arith.constant 0 : index
    %33 = vector.load %arg2[%c0_15, %c0_16, %c0_17] : memref<2x8x16xf32, #tpu.memory_space<vmem>>, vector<2x8x16xf32>
    %34 = vector.broadcast %22 : vector<2x8x1xf32> to vector<2x8x16xf32>
    %35 = arith.mulf %33, %34 : vector<2x8x16xf32>
    %c0_18 = arith.constant 0 : index
    %c0_19 = arith.constant 0 : index
    %c0_20 = arith.constant 0 : index
    %36 = vector.load %arg11[%c0_18, %c0_19, %c0_20] : memref<2x16x128xf32, #tpu.memory_space<vmem>>, vector<1x16x128xf32>
    %37 = vector.shape_cast %36 : vector<1x16x128xf32> to vector<16x128xf32>
    %38 = vector.extract_strided_slice %37 {offsets = [6, 0], sizes = [1, 16], strides = [1, 1]} : vector<16x128xf32> to vector<1x16xf32>
    %39 = vector.extract_strided_slice %37 {offsets = [7, 0], sizes = [1, 16], strides = [1, 1]} : vector<16x128xf32> to vector<1x16xf32>
    %40 = vector.extract_strided_slice %37 {offsets = [8, 0], sizes = [1, 16], strides = [1, 1]} : vector<16x128xf32> to vector<1x16xf32>
    %41 = vector.extract_strided_slice %37 {offsets = [9, 0], sizes = [1, 32], strides = [1, 1]} : vector<16x128xf32> to vector<1x32xf32>
    %42 = vector.extract_strided_slice %37 {offsets = [10, 0], sizes = [1, 16], strides = [1, 1]} : vector<16x128xf32> to vector<1x16xf32>
    %43 = vector.extract_strided_slice %37 {offsets = [11, 0], sizes = [1, 16], strides = [1, 1]} : vector<16x128xf32> to vector<1x16xf32>
    %44 = vector.extract_strided_slice %37 {offsets = [12, 0], sizes = [1, 16], strides = [1, 1]} : vector<16x128xf32> to vector<1x16xf32>
    %45 = vector.shape_cast %35 : vector<2x8x16xf32> to vector<16x16xf32>
    %cst_21 = arith.constant 0.000000e+00 : f32
    %46 = vector.broadcast %cst_21 : f32 to vector<16x16xf32>
    %c0_22 = arith.constant 0 : index
    %c0_23 = arith.constant 0 : index
    %c0_24 = arith.constant 0 : index
    %47 = vector.load %arg7[%c0_22, %c0_23, %c0_24] : memref<12x16x8xf32, #tpu.memory_space<vmem>>, vector<1x16x8xf32>
    %48 = vector.shape_cast %47 : vector<1x16x8xf32> to vector<16x8xf32>
    %c2 = arith.constant 2 : index
    %c0_25 = arith.constant 0 : index
    %c0_26 = arith.constant 0 : index
    %49 = vector.load %arg7[%c2, %c0_25, %c0_26] : memref<12x16x8xf32, #tpu.memory_space<vmem>>, vector<1x16x8xf32>
    %50 = vector.shape_cast %49 : vector<1x16x8xf32> to vector<16x8xf32>
    %c4 = arith.constant 4 : index
    %c0_27 = arith.constant 0 : index
    %c0_28 = arith.constant 0 : index
    %51 = vector.load %arg7[%c4, %c0_27, %c0_28] : memref<12x16x8xf32, #tpu.memory_space<vmem>>, vector<1x16x8xf32>
    %52 = vector.shape_cast %51 : vector<1x16x8xf32> to vector<16x8xf32>
    %53 = vector.extract_strided_slice %37 {offsets = [0, 0], sizes = [1, 8], strides = [1, 1]} : vector<16x128xf32> to vector<1x8xf32>
    %54 = vector.extract_strided_slice %37 {offsets = [2, 0], sizes = [1, 8], strides = [1, 1]} : vector<16x128xf32> to vector<1x8xf32>
    %55 = vector.extract_strided_slice %37 {offsets = [4, 0], sizes = [1, 8], strides = [1, 1]} : vector<16x128xf32> to vector<1x8xf32>
    %cst_29 = arith.constant dense<0.000000e+00> : vector<16x8xf32>
    %56 = tpu.matmul %45, %48, %cst_29 {dimension_numbers = #tpu.dot_dimension_numbers<[1], [0], [0], [1], [0, 0, 1, 1], [], []>} : vector<16x16xf32>, vector<16x8xf32>, vector<16x8xf32> -> vector<16x8xf32>
    %57 = vector.broadcast %53 : vector<1x8xf32> to vector<16x8xf32>
    %58 = arith.addf %56, %57 : vector<16x8xf32>
    %59 = vector.shape_cast %58 : vector<16x8xf32> to vector<2x8x8xf32>
    %cst_30 = arith.constant dense<0.000000e+00> : vector<16x8xf32>
    %60 = tpu.matmul %45, %50, %cst_30 {dimension_numbers = #tpu.dot_dimension_numbers<[1], [0], [0], [1], [0, 0, 1, 1], [], []>} : vector<16x16xf32>, vector<16x8xf32>, vector<16x8xf32> -> vector<16x8xf32>
    %61 = vector.broadcast %54 : vector<1x8xf32> to vector<16x8xf32>
    %62 = arith.addf %60, %61 : vector<16x8xf32>
    %63 = vector.shape_cast %62 : vector<16x8xf32> to vector<2x8x8xf32>
    %cst_31 = arith.constant dense<0.000000e+00> : vector<16x8xf32>
    %64 = tpu.matmul %45, %52, %cst_31 {dimension_numbers = #tpu.dot_dimension_numbers<[1], [0], [0], [1], [0, 0, 1, 1], [], []>} : vector<16x16xf32>, vector<16x8xf32>, vector<16x8xf32> -> vector<16x8xf32>
    %65 = vector.broadcast %55 : vector<1x8xf32> to vector<16x8xf32>
    %66 = arith.addf %64, %65 : vector<16x8xf32>
    %67 = vector.shape_cast %66 : vector<16x8xf32> to vector<2x8x8xf32>
    "tpu.trace_start"() <{level = 10 : i32, message = "bqd,bkd->bqk"}> : () -> ()
    %cst_32 = arith.constant dense<0.000000e+00> : vector<2x8x8xf32>
    %68 = tpu.matmul %59, %63, %cst_32 {dimension_numbers = #tpu.dot_dimension_numbers<[2], [2], [1], [1], [0, 0, 0, 1, 1, 1], [0], [0]>} : vector<2x8x8xf32>, vector<2x8x8xf32>, vector<2x8x8xf32> -> vector<2x8x8xf32>
    "tpu.trace_stop"() : () -> ()
    %69 = arith.addf %68, %32 : vector<2x8x8xf32>
    %cst_33 = arith.constant dense<0xFF800000> : vector<2x8xf32>
    %70 = vector.multi_reduction <maximumf>, %69, %cst_33 [2] : vector<2x8x8xf32> to vector<2x8xf32>
    %71 = vector.shape_cast %70 : vector<2x8xf32> to vector<2x8x1xf32>
    %72 = vector.broadcast %71 : vector<2x8x1xf32> to vector<2x8x8xf32>
    %73 = arith.subf %69, %72 : vector<2x8x8xf32>
    %74 = math.exp %73 : vector<2x8x8xf32>
    %cst_34 = arith.constant dense<0.000000e+00> : vector<2x8xf32>
    %75 = vector.multi_reduction <add>, %74, %cst_34 [2] : vector<2x8x8xf32> to vector<2x8xf32>
    %76 = vector.shape_cast %75 : vector<2x8xf32> to vector<2x8x1xf32>
    %77 = vector.broadcast %76 : vector<2x8x1xf32> to vector<2x8x8xf32>
    %78 = arith.divf %74, %77 : vector<2x8x8xf32>
    "tpu.trace_start"() <{level = 10 : i32, message = "bqk,bkd->bqd"}> : () -> ()
    %cst_35 = arith.constant dense<0.000000e+00> : vector<2x8x8xf32>
    %79 = tpu.matmul %78, %67, %cst_35 {dimension_numbers = #tpu.dot_dimension_numbers<[2], [1], [1], [2], [0, 0, 0, 1, 1, 2], [0], [0]>} : vector<2x8x8xf32>, vector<2x8x8xf32>, vector<2x8x8xf32> -> vector<2x8x8xf32>
    "tpu.trace_stop"() : () -> ()
    %80 = vector.shape_cast %79 : vector<2x8x8xf32> to vector<16x8xf32>
    %c0_36 = arith.constant 0 : index
    %c0_37 = arith.constant 0 : index
    %c0_38 = arith.constant 0 : index
    %81 = vector.load %arg8[%c0_36, %c0_37, %c0_38] : memref<4x8x16xf32, #tpu.memory_space<vmem>>, vector<1x8x16xf32>
    %82 = vector.shape_cast %81 : vector<1x8x16xf32> to vector<8x16xf32>
    %cst_39 = arith.constant dense<0.000000e+00> : vector<16x16xf32>
    %83 = tpu.matmul %80, %82, %cst_39 {dimension_numbers = #tpu.dot_dimension_numbers<[1], [0], [0], [1], [0, 0, 1, 1], [], []>} : vector<16x8xf32>, vector<8x16xf32>, vector<16x16xf32> -> vector<16x16xf32>
    %84 = arith.addf %46, %83 : vector<16x16xf32>
    %c1 = arith.constant 1 : index
    %c0_40 = arith.constant 0 : index
    %c0_41 = arith.constant 0 : index
    %85 = vector.load %arg7[%c1, %c0_40, %c0_41] : memref<12x16x8xf32, #tpu.memory_space<vmem>>, vector<1x16x8xf32>
    %86 = vector.shape_cast %85 : vector<1x16x8xf32> to vector<16x8xf32>
    %c3 = arith.constant 3 : index
    %c0_42 = arith.constant 0 : index
    %c0_43 = arith.constant 0 : index
    %87 = vector.load %arg7[%c3, %c0_42, %c0_43] : memref<12x16x8xf32, #tpu.memory_space<vmem>>, vector<1x16x8xf32>
    %88 = vector.shape_cast %87 : vector<1x16x8xf32> to vector<16x8xf32>
    %c5 = arith.constant 5 : index
    %c0_44 = arith.constant 0 : index
    %c0_45 = arith.constant 0 : index
    %89 = vector.load %arg7[%c5, %c0_44, %c0_45] : memref<12x16x8xf32, #tpu.memory_space<vmem>>, vector<1x16x8xf32>
    %90 = vector.shape_cast %89 : vector<1x16x8xf32> to vector<16x8xf32>
    %91 = vector.extract_strided_slice %37 {offsets = [1, 0], sizes = [1, 8], strides = [1, 1]} : vector<16x128xf32> to vector<1x8xf32>
    %92 = vector.extract_strided_slice %37 {offsets = [3, 0], sizes = [1, 8], strides = [1, 1]} : vector<16x128xf32> to vector<1x8xf32>
    %93 = vector.extract_strided_slice %37 {offsets = [5, 0], sizes = [1, 8], strides = [1, 1]} : vector<16x128xf32> to vector<1x8xf32>
    %cst_46 = arith.constant dense<0.000000e+00> : vector<16x8xf32>
    %94 = tpu.matmul %45, %86, %cst_46 {dimension_numbers = #tpu.dot_dimension_numbers<[1], [0], [0], [1], [0, 0, 1, 1], [], []>} : vector<16x16xf32>, vector<16x8xf32>, vector<16x8xf32> -> vector<16x8xf32>
    %95 = vector.broadcast %91 : vector<1x8xf32> to vector<16x8xf32>
    %96 = arith.addf %94, %95 : vector<16x8xf32>
    %97 = vector.shape_cast %96 : vector<16x8xf32> to vector<2x8x8xf32>
    %cst_47 = arith.constant dense<0.000000e+00> : vector<16x8xf32>
    %98 = tpu.matmul %45, %88, %cst_47 {dimension_numbers = #tpu.dot_dimension_numbers<[1], [0], [0], [1], [0, 0, 1, 1], [], []>} : vector<16x16xf32>, vector<16x8xf32>, vector<16x8xf32> -> vector<16x8xf32>
    %99 = vector.broadcast %92 : vector<1x8xf32> to vector<16x8xf32>
    %100 = arith.addf %98, %99 : vector<16x8xf32>
    %101 = vector.shape_cast %100 : vector<16x8xf32> to vector<2x8x8xf32>
    %cst_48 = arith.constant dense<0.000000e+00> : vector<16x8xf32>
    %102 = tpu.matmul %45, %90, %cst_48 {dimension_numbers = #tpu.dot_dimension_numbers<[1], [0], [0], [1], [0, 0, 1, 1], [], []>} : vector<16x16xf32>, vector<16x8xf32>, vector<16x8xf32> -> vector<16x8xf32>
    %103 = vector.broadcast %93 : vector<1x8xf32> to vector<16x8xf32>
    %104 = arith.addf %102, %103 : vector<16x8xf32>
    %105 = vector.shape_cast %104 : vector<16x8xf32> to vector<2x8x8xf32>
    "tpu.trace_start"() <{level = 10 : i32, message = "bqd,bkd->bqk"}> : () -> ()
    %cst_49 = arith.constant dense<0.000000e+00> : vector<2x8x8xf32>
    %106 = tpu.matmul %97, %101, %cst_49 {dimension_numbers = #tpu.dot_dimension_numbers<[2], [2], [1], [1], [0, 0, 0, 1, 1, 1], [0], [0]>} : vector<2x8x8xf32>, vector<2x8x8xf32>, vector<2x8x8xf32> -> vector<2x8x8xf32>
    "tpu.trace_stop"() : () -> ()
    %107 = arith.addf %106, %32 : vector<2x8x8xf32>
    %cst_50 = arith.constant dense<0xFF800000> : vector<2x8xf32>
    %108 = vector.multi_reduction <maximumf>, %107, %cst_50 [2] : vector<2x8x8xf32> to vector<2x8xf32>
    %109 = vector.shape_cast %108 : vector<2x8xf32> to vector<2x8x1xf32>
    %110 = vector.broadcast %109 : vector<2x8x1xf32> to vector<2x8x8xf32>
    %111 = arith.subf %107, %110 : vector<2x8x8xf32>
    %112 = math.exp %111 : vector<2x8x8xf32>
    %cst_51 = arith.constant dense<0.000000e+00> : vector<2x8xf32>
    %113 = vector.multi_reduction <add>, %112, %cst_51 [2] : vector<2x8x8xf32> to vector<2x8xf32>
    %114 = vector.shape_cast %113 : vector<2x8xf32> to vector<2x8x1xf32>
    %115 = vector.broadcast %114 : vector<2x8x1xf32> to vector<2x8x8xf32>
    %116 = arith.divf %112, %115 : vector<2x8x8xf32>
    "tpu.trace_start"() <{level = 10 : i32, message = "bqk,bkd->bqd"}> : () -> ()
    %cst_52 = arith.constant dense<0.000000e+00> : vector<2x8x8xf32>
    %117 = tpu.matmul %116, %105, %cst_52 {dimension_numbers = #tpu.dot_dimension_numbers<[2], [1], [1], [2], [0, 0, 0, 1, 1, 2], [0], [0]>} : vector<2x8x8xf32>, vector<2x8x8xf32>, vector<2x8x8xf32> -> vector<2x8x8xf32>
    "tpu.trace_stop"() : () -> ()
    %118 = vector.shape_cast %117 : vector<2x8x8xf32> to vector<16x8xf32>
    %c1_53 = arith.constant 1 : index
    %c0_54 = arith.constant 0 : index
    %c0_55 = arith.constant 0 : index
    %119 = vector.load %arg8[%c1_53, %c0_54, %c0_55] : memref<4x8x16xf32, #tpu.memory_space<vmem>>, vector<1x8x16xf32>
    %120 = vector.shape_cast %119 : vector<1x8x16xf32> to vector<8x16xf32>
    %cst_56 = arith.constant dense<0.000000e+00> : vector<16x16xf32>
    %121 = tpu.matmul %118, %120, %cst_56 {dimension_numbers = #tpu.dot_dimension_numbers<[1], [0], [0], [1], [0, 0, 1, 1], [], []>} : vector<16x8xf32>, vector<8x16xf32>, vector<16x16xf32> -> vector<16x16xf32>
    %122 = arith.addf %84, %121 : vector<16x16xf32>
    %123 = vector.broadcast %38 : vector<1x16xf32> to vector<16x16xf32>
    %124 = arith.addf %122, %123 : vector<16x16xf32>
    %125 = vector.shape_cast %124 : vector<16x16xf32> to vector<2x8x16xf32>
    %126 = arith.addf %35, %125 : vector<2x8x16xf32>
    %cst_57 = arith.constant dense<0.000000e+00> : vector<2x8xf32>
    %127 = vector.multi_reduction <add>, %126, %cst_57 [2] : vector<2x8x16xf32> to vector<2x8xf32>
    %128 = vector.shape_cast %127 : vector<2x8xf32> to vector<2x8x1xf32>
    %cst_58 = arith.constant 1.600000e+01 : f32
    %129 = vector.broadcast %cst_58 : f32 to vector<2x8x1xf32>
    %130 = arith.divf %128, %129 : vector<2x8x1xf32>
    %131 = vector.broadcast %130 : vector<2x8x1xf32> to vector<2x8x16xf32>
    %132 = arith.subf %126, %131 : vector<2x8x16xf32>
    %133 = arith.mulf %132, %132 : vector<2x8x16xf32>
    %cst_59 = arith.constant dense<0.000000e+00> : vector<2x8xf32>
    %134 = vector.multi_reduction <add>, %133, %cst_59 [2] : vector<2x8x16xf32> to vector<2x8xf32>
    %135 = vector.shape_cast %134 : vector<2x8xf32> to vector<2x8x1xf32>
    %cst_60 = arith.constant 1.600000e+01 : f32
    %136 = vector.broadcast %cst_60 : f32 to vector<2x8x1xf32>
    %137 = arith.divf %135, %136 : vector<2x8x1xf32>
    %138 = vector.broadcast %130 : vector<2x8x1xf32> to vector<2x8x16xf32>
    %139 = arith.subf %126, %138 : vector<2x8x16xf32>
    %cst_61 = arith.constant 9.99999974E-6 : f32
    %140 = vector.broadcast %cst_61 : f32 to vector<2x8x1xf32>
    %141 = arith.addf %137, %140 : vector<2x8x1xf32>
    %142 = math.rsqrt %141 : vector<2x8x1xf32>
    %143 = vector.broadcast %142 : vector<2x8x1xf32> to vector<2x8x16xf32>
    %144 = arith.mulf %139, %143 : vector<2x8x16xf32>
    %145 = vector.shape_cast %39 : vector<1x16xf32> to vector<1x1x16xf32>
    %146 = vector.broadcast %145 : vector<1x1x16xf32> to vector<2x8x16xf32>
    %147 = arith.mulf %144, %146 : vector<2x8x16xf32>
    %148 = vector.shape_cast %40 : vector<1x16xf32> to vector<1x1x16xf32>
    %149 = vector.broadcast %148 : vector<1x1x16xf32> to vector<2x8x16xf32>
    %150 = arith.addf %147, %149 : vector<2x8x16xf32>
    %151 = vector.broadcast %22 : vector<2x8x1xf32> to vector<2x8x16xf32>
    %152 = arith.mulf %150, %151 : vector<2x8x16xf32>
    %153 = vector.shape_cast %152 : vector<2x8x16xf32> to vector<16x16xf32>
    %c0_62 = arith.constant 0 : index
    %c0_63 = arith.constant 0 : index
    %c0_64 = arith.constant 0 : index
    %154 = vector.load %arg9[%c0_62, %c0_63, %c0_64] : memref<2x16x32xf32, #tpu.memory_space<vmem>>, vector<1x16x32xf32>
    %155 = vector.shape_cast %154 : vector<1x16x32xf32> to vector<16x32xf32>
    %cst_65 = arith.constant dense<0.000000e+00> : vector<16x32xf32>
    %156 = tpu.matmul %153, %155, %cst_65 {dimension_numbers = #tpu.dot_dimension_numbers<[1], [0], [0], [1], [0, 0, 1, 1], [], []>} : vector<16x16xf32>, vector<16x32xf32>, vector<16x32xf32> -> vector<16x32xf32>
    %157 = vector.broadcast %41 : vector<1x32xf32> to vector<16x32xf32>
    %158 = arith.addf %156, %157 : vector<16x32xf32>
    %cst_66 = arith.constant 0.000000e+00 : f32
    %159 = vector.broadcast %cst_66 : f32 to vector<16x32xf32>
    %160 = arith.maximumf %158, %159 : vector<16x32xf32>
    %161 = vector.shape_cast %160 : vector<16x32xf32> to vector<2x8x32xf32>
    %162 = vector.broadcast %22 : vector<2x8x1xf32> to vector<2x8x32xf32>
    %163 = arith.mulf %161, %162 : vector<2x8x32xf32>
    %164 = vector.shape_cast %163 : vector<2x8x32xf32> to vector<16x32xf32>
    %c0_67 = arith.constant 0 : index
    %c0_68 = arith.constant 0 : index
    %c0_69 = arith.constant 0 : index
    %165 = vector.load %arg10[%c0_67, %c0_68, %c0_69] : memref<2x32x16xf32, #tpu.memory_space<vmem>>, vector<1x32x16xf32>
    %166 = vector.shape_cast %165 : vector<1x32x16xf32> to vector<32x16xf32>
    %cst_70 = arith.constant dense<0.000000e+00> : vector<16x16xf32>
    %167 = tpu.matmul %164, %166, %cst_70 {dimension_numbers = #tpu.dot_dimension_numbers<[1], [0], [0], [1], [0, 0, 1, 1], [], []>} : vector<16x32xf32>, vector<32x16xf32>, vector<16x16xf32> -> vector<16x16xf32>
    %168 = vector.broadcast %42 : vector<1x16xf32> to vector<16x16xf32>
    %169 = arith.addf %167, %168 : vector<16x16xf32>
    %170 = vector.shape_cast %169 : vector<16x16xf32> to vector<2x8x16xf32>
    %171 = vector.broadcast %22 : vector<2x8x1xf32> to vector<2x8x16xf32>
    %172 = arith.mulf %170, %171 : vector<2x8x16xf32>
    %173 = arith.addf %150, %172 : vector<2x8x16xf32>
    %cst_71 = arith.constant dense<0.000000e+00> : vector<2x8xf32>
    %174 = vector.multi_reduction <add>, %173, %cst_71 [2] : vector<2x8x16xf32> to vector<2x8xf32>
    %175 = vector.shape_cast %174 : vector<2x8xf32> to vector<2x8x1xf32>
    %cst_72 = arith.constant 1.600000e+01 : f32
    %176 = vector.broadcast %cst_72 : f32 to vector<2x8x1xf32>
    %177 = arith.divf %175, %176 : vector<2x8x1xf32>
    %178 = vector.broadcast %177 : vector<2x8x1xf32> to vector<2x8x16xf32>
    %179 = arith.subf %173, %178 : vector<2x8x16xf32>
    %180 = arith.mulf %179, %179 : vector<2x8x16xf32>
    %cst_73 = arith.constant dense<0.000000e+00> : vector<2x8xf32>
    %181 = vector.multi_reduction <add>, %180, %cst_73 [2] : vector<2x8x16xf32> to vector<2x8xf32>
    %182 = vector.shape_cast %181 : vector<2x8xf32> to vector<2x8x1xf32>
    %cst_74 = arith.constant 1.600000e+01 : f32
    %183 = vector.broadcast %cst_74 : f32 to vector<2x8x1xf32>
    %184 = arith.divf %182, %183 : vector<2x8x1xf32>
    %185 = vector.broadcast %177 : vector<2x8x1xf32> to vector<2x8x16xf32>
    %186 = arith.subf %173, %185 : vector<2x8x16xf32>
    %cst_75 = arith.constant 9.99999974E-6 : f32
    %187 = vector.broadcast %cst_75 : f32 to vector<2x8x1xf32>
    %188 = arith.addf %184, %187 : vector<2x8x1xf32>
    %189 = math.rsqrt %188 : vector<2x8x1xf32>
    %190 = vector.broadcast %189 : vector<2x8x1xf32> to vector<2x8x16xf32>
    %191 = arith.mulf %186, %190 : vector<2x8x16xf32>
    %192 = vector.shape_cast %43 : vector<1x16xf32> to vector<1x1x16xf32>
    %193 = vector.broadcast %192 : vector<1x1x16xf32> to vector<2x8x16xf32>
    %194 = arith.mulf %191, %193 : vector<2x8x16xf32>
    %195 = vector.shape_cast %44 : vector<1x16xf32> to vector<1x1x16xf32>
    %196 = vector.broadcast %195 : vector<1x1x16xf32> to vector<2x8x16xf32>
    %197 = arith.addf %194, %196 : vector<2x8x16xf32>
    %c1_76 = arith.constant 1 : index
    %c0_77 = arith.constant 0 : index
    %c0_78 = arith.constant 0 : index
    %198 = vector.load %arg11[%c1_76, %c0_77, %c0_78] : memref<2x16x128xf32, #tpu.memory_space<vmem>>, vector<1x16x128xf32>
    %199 = vector.shape_cast %198 : vector<1x16x128xf32> to vector<16x128xf32>
    %200 = vector.extract_strided_slice %199 {offsets = [6, 0], sizes = [1, 16], strides = [1, 1]} : vector<16x128xf32> to vector<1x16xf32>
    %201 = vector.extract_strided_slice %199 {offsets = [7, 0], sizes = [1, 16], strides = [1, 1]} : vector<16x128xf32> to vector<1x16xf32>
    %202 = vector.extract_strided_slice %199 {offsets = [8, 0], sizes = [1, 16], strides = [1, 1]} : vector<16x128xf32> to vector<1x16xf32>
    %203 = vector.extract_strided_slice %199 {offsets = [9, 0], sizes = [1, 32], strides = [1, 1]} : vector<16x128xf32> to vector<1x32xf32>
    %204 = vector.extract_strided_slice %199 {offsets = [10, 0], sizes = [1, 16], strides = [1, 1]} : vector<16x128xf32> to vector<1x16xf32>
    %205 = vector.extract_strided_slice %199 {offsets = [11, 0], sizes = [1, 16], strides = [1, 1]} : vector<16x128xf32> to vector<1x16xf32>
    %206 = vector.extract_strided_slice %199 {offsets = [12, 0], sizes = [1, 16], strides = [1, 1]} : vector<16x128xf32> to vector<1x16xf32>
    %207 = vector.shape_cast %197 : vector<2x8x16xf32> to vector<16x16xf32>
    %cst_79 = arith.constant 0.000000e+00 : f32
    %208 = vector.broadcast %cst_79 : f32 to vector<16x16xf32>
    %c6 = arith.constant 6 : index
    %c0_80 = arith.constant 0 : index
    %c0_81 = arith.constant 0 : index
    %209 = vector.load %arg7[%c6, %c0_80, %c0_81] : memref<12x16x8xf32, #tpu.memory_space<vmem>>, vector<1x16x8xf32>
    %210 = vector.shape_cast %209 : vector<1x16x8xf32> to vector<16x8xf32>
    %c8 = arith.constant 8 : index
    %c0_82 = arith.constant 0 : index
    %c0_83 = arith.constant 0 : index
    %211 = vector.load %arg7[%c8, %c0_82, %c0_83] : memref<12x16x8xf32, #tpu.memory_space<vmem>>, vector<1x16x8xf32>
    %212 = vector.shape_cast %211 : vector<1x16x8xf32> to vector<16x8xf32>
    %c10 = arith.constant 10 : index
    %c0_84 = arith.constant 0 : index
    %c0_85 = arith.constant 0 : index
    %213 = vector.load %arg7[%c10, %c0_84, %c0_85] : memref<12x16x8xf32, #tpu.memory_space<vmem>>, vector<1x16x8xf32>
    %214 = vector.shape_cast %213 : vector<1x16x8xf32> to vector<16x8xf32>
    %215 = vector.extract_strided_slice %199 {offsets = [0, 0], sizes = [1, 8], strides = [1, 1]} : vector<16x128xf32> to vector<1x8xf32>
    %216 = vector.extract_strided_slice %199 {offsets = [2, 0], sizes = [1, 8], strides = [1, 1]} : vector<16x128xf32> to vector<1x8xf32>
    %217 = vector.extract_strided_slice %199 {offsets = [4, 0], sizes = [1, 8], strides = [1, 1]} : vector<16x128xf32> to vector<1x8xf32>
    %cst_86 = arith.constant dense<0.000000e+00> : vector<16x8xf32>
    %218 = tpu.matmul %207, %210, %cst_86 {dimension_numbers = #tpu.dot_dimension_numbers<[1], [0], [0], [1], [0, 0, 1, 1], [], []>} : vector<16x16xf32>, vector<16x8xf32>, vector<16x8xf32> -> vector<16x8xf32>
    %219 = vector.broadcast %215 : vector<1x8xf32> to vector<16x8xf32>
    %220 = arith.addf %218, %219 : vector<16x8xf32>
    %221 = vector.shape_cast %220 : vector<16x8xf32> to vector<2x8x8xf32>
    %cst_87 = arith.constant dense<0.000000e+00> : vector<16x8xf32>
    %222 = tpu.matmul %207, %212, %cst_87 {dimension_numbers = #tpu.dot_dimension_numbers<[1], [0], [0], [1], [0, 0, 1, 1], [], []>} : vector<16x16xf32>, vector<16x8xf32>, vector<16x8xf32> -> vector<16x8xf32>
    %223 = vector.broadcast %216 : vector<1x8xf32> to vector<16x8xf32>
    %224 = arith.addf %222, %223 : vector<16x8xf32>
    %225 = vector.shape_cast %224 : vector<16x8xf32> to vector<2x8x8xf32>
    %cst_88 = arith.constant dense<0.000000e+00> : vector<16x8xf32>
    %226 = tpu.matmul %207, %214, %cst_88 {dimension_numbers = #tpu.dot_dimension_numbers<[1], [0], [0], [1], [0, 0, 1, 1], [], []>} : vector<16x16xf32>, vector<16x8xf32>, vector<16x8xf32> -> vector<16x8xf32>
    %227 = vector.broadcast %217 : vector<1x8xf32> to vector<16x8xf32>
    %228 = arith.addf %226, %227 : vector<16x8xf32>
    %229 = vector.shape_cast %228 : vector<16x8xf32> to vector<2x8x8xf32>
    "tpu.trace_start"() <{level = 10 : i32, message = "bqd,bkd->bqk"}> : () -> ()
    %cst_89 = arith.constant dense<0.000000e+00> : vector<2x8x8xf32>
    %230 = tpu.matmul %221, %225, %cst_89 {dimension_numbers = #tpu.dot_dimension_numbers<[2], [2], [1], [1], [0, 0, 0, 1, 1, 1], [0], [0]>} : vector<2x8x8xf32>, vector<2x8x8xf32>, vector<2x8x8xf32> -> vector<2x8x8xf32>
    "tpu.trace_stop"() : () -> ()
    %231 = arith.addf %230, %32 : vector<2x8x8xf32>
    %cst_90 = arith.constant dense<0xFF800000> : vector<2x8xf32>
    %232 = vector.multi_reduction <maximumf>, %231, %cst_90 [2] : vector<2x8x8xf32> to vector<2x8xf32>
    %233 = vector.shape_cast %232 : vector<2x8xf32> to vector<2x8x1xf32>
    %234 = vector.broadcast %233 : vector<2x8x1xf32> to vector<2x8x8xf32>
    %235 = arith.subf %231, %234 : vector<2x8x8xf32>
    %236 = math.exp %235 : vector<2x8x8xf32>
    %cst_91 = arith.constant dense<0.000000e+00> : vector<2x8xf32>
    %237 = vector.multi_reduction <add>, %236, %cst_91 [2] : vector<2x8x8xf32> to vector<2x8xf32>
    %238 = vector.shape_cast %237 : vector<2x8xf32> to vector<2x8x1xf32>
    %239 = vector.broadcast %238 : vector<2x8x1xf32> to vector<2x8x8xf32>
    %240 = arith.divf %236, %239 : vector<2x8x8xf32>
    "tpu.trace_start"() <{level = 10 : i32, message = "bqk,bkd->bqd"}> : () -> ()
    %cst_92 = arith.constant dense<0.000000e+00> : vector<2x8x8xf32>
    %241 = tpu.matmul %240, %229, %cst_92 {dimension_numbers = #tpu.dot_dimension_numbers<[2], [1], [1], [2], [0, 0, 0, 1, 1, 2], [0], [0]>} : vector<2x8x8xf32>, vector<2x8x8xf32>, vector<2x8x8xf32> -> vector<2x8x8xf32>
    "tpu.trace_stop"() : () -> ()
    %242 = vector.shape_cast %241 : vector<2x8x8xf32> to vector<16x8xf32>
    %c2_93 = arith.constant 2 : index
    %c0_94 = arith.constant 0 : index
    %c0_95 = arith.constant 0 : index
    %243 = vector.load %arg8[%c2_93, %c0_94, %c0_95] : memref<4x8x16xf32, #tpu.memory_space<vmem>>, vector<1x8x16xf32>
    %244 = vector.shape_cast %243 : vector<1x8x16xf32> to vector<8x16xf32>
    %cst_96 = arith.constant dense<0.000000e+00> : vector<16x16xf32>
    %245 = tpu.matmul %242, %244, %cst_96 {dimension_numbers = #tpu.dot_dimension_numbers<[1], [0], [0], [1], [0, 0, 1, 1], [], []>} : vector<16x8xf32>, vector<8x16xf32>, vector<16x16xf32> -> vector<16x16xf32>
    %246 = arith.addf %208, %245 : vector<16x16xf32>
    %c7 = arith.constant 7 : index
    %c0_97 = arith.constant 0 : index
    %c0_98 = arith.constant 0 : index
    %247 = vector.load %arg7[%c7, %c0_97, %c0_98] : memref<12x16x8xf32, #tpu.memory_space<vmem>>, vector<1x16x8xf32>
    %248 = vector.shape_cast %247 : vector<1x16x8xf32> to vector<16x8xf32>
    %c9 = arith.constant 9 : index
    %c0_99 = arith.constant 0 : index
    %c0_100 = arith.constant 0 : index
    %249 = vector.load %arg7[%c9, %c0_99, %c0_100] : memref<12x16x8xf32, #tpu.memory_space<vmem>>, vector<1x16x8xf32>
    %250 = vector.shape_cast %249 : vector<1x16x8xf32> to vector<16x8xf32>
    %c11 = arith.constant 11 : index
    %c0_101 = arith.constant 0 : index
    %c0_102 = arith.constant 0 : index
    %251 = vector.load %arg7[%c11, %c0_101, %c0_102] : memref<12x16x8xf32, #tpu.memory_space<vmem>>, vector<1x16x8xf32>
    %252 = vector.shape_cast %251 : vector<1x16x8xf32> to vector<16x8xf32>
    %253 = vector.extract_strided_slice %199 {offsets = [1, 0], sizes = [1, 8], strides = [1, 1]} : vector<16x128xf32> to vector<1x8xf32>
    %254 = vector.extract_strided_slice %199 {offsets = [3, 0], sizes = [1, 8], strides = [1, 1]} : vector<16x128xf32> to vector<1x8xf32>
    %255 = vector.extract_strided_slice %199 {offsets = [5, 0], sizes = [1, 8], strides = [1, 1]} : vector<16x128xf32> to vector<1x8xf32>
    %cst_103 = arith.constant dense<0.000000e+00> : vector<16x8xf32>
    %256 = tpu.matmul %207, %248, %cst_103 {dimension_numbers = #tpu.dot_dimension_numbers<[1], [0], [0], [1], [0, 0, 1, 1], [], []>} : vector<16x16xf32>, vector<16x8xf32>, vector<16x8xf32> -> vector<16x8xf32>
    %257 = vector.broadcast %253 : vector<1x8xf32> to vector<16x8xf32>
    %258 = arith.addf %256, %257 : vector<16x8xf32>
    %259 = vector.shape_cast %258 : vector<16x8xf32> to vector<2x8x8xf32>
    %cst_104 = arith.constant dense<0.000000e+00> : vector<16x8xf32>
    %260 = tpu.matmul %207, %250, %cst_104 {dimension_numbers = #tpu.dot_dimension_numbers<[1], [0], [0], [1], [0, 0, 1, 1], [], []>} : vector<16x16xf32>, vector<16x8xf32>, vector<16x8xf32> -> vector<16x8xf32>
    %261 = vector.broadcast %254 : vector<1x8xf32> to vector<16x8xf32>
    %262 = arith.addf %260, %261 : vector<16x8xf32>
    %263 = vector.shape_cast %262 : vector<16x8xf32> to vector<2x8x8xf32>
    %cst_105 = arith.constant dense<0.000000e+00> : vector<16x8xf32>
    %264 = tpu.matmul %207, %252, %cst_105 {dimension_numbers = #tpu.dot_dimension_numbers<[1], [0], [0], [1], [0, 0, 1, 1], [], []>} : vector<16x16xf32>, vector<16x8xf32>, vector<16x8xf32> -> vector<16x8xf32>
    %265 = vector.broadcast %255 : vector<1x8xf32> to vector<16x8xf32>
    %266 = arith.addf %264, %265 : vector<16x8xf32>
    %267 = vector.shape_cast %266 : vector<16x8xf32> to vector<2x8x8xf32>
    "tpu.trace_start"() <{level = 10 : i32, message = "bqd,bkd->bqk"}> : () -> ()
    %cst_106 = arith.constant dense<0.000000e+00> : vector<2x8x8xf32>
    %268 = tpu.matmul %259, %263, %cst_106 {dimension_numbers = #tpu.dot_dimension_numbers<[2], [2], [1], [1], [0, 0, 0, 1, 1, 1], [0], [0]>} : vector<2x8x8xf32>, vector<2x8x8xf32>, vector<2x8x8xf32> -> vector<2x8x8xf32>
    "tpu.trace_stop"() : () -> ()
    %269 = arith.addf %268, %32 : vector<2x8x8xf32>
    %cst_107 = arith.constant dense<0xFF800000> : vector<2x8xf32>
    %270 = vector.multi_reduction <maximumf>, %269, %cst_107 [2] : vector<2x8x8xf32> to vector<2x8xf32>
    %271 = vector.shape_cast %270 : vector<2x8xf32> to vector<2x8x1xf32>
    %272 = vector.broadcast %271 : vector<2x8x1xf32> to vector<2x8x8xf32>
    %273 = arith.subf %269, %272 : vector<2x8x8xf32>
    %274 = math.exp %273 : vector<2x8x8xf32>
    %cst_108 = arith.constant dense<0.000000e+00> : vector<2x8xf32>
    %275 = vector.multi_reduction <add>, %274, %cst_108 [2] : vector<2x8x8xf32> to vector<2x8xf32>
    %276 = vector.shape_cast %275 : vector<2x8xf32> to vector<2x8x1xf32>
    %277 = vector.broadcast %276 : vector<2x8x1xf32> to vector<2x8x8xf32>
    %278 = arith.divf %274, %277 : vector<2x8x8xf32>
    "tpu.trace_start"() <{level = 10 : i32, message = "bqk,bkd->bqd"}> : () -> ()
    %cst_109 = arith.constant dense<0.000000e+00> : vector<2x8x8xf32>
    %279 = tpu.matmul %278, %267, %cst_109 {dimension_numbers = #tpu.dot_dimension_numbers<[2], [1], [1], [2], [0, 0, 0, 1, 1, 2], [0], [0]>} : vector<2x8x8xf32>, vector<2x8x8xf32>, vector<2x8x8xf32> -> vector<2x8x8xf32>
    "tpu.trace_stop"() : () -> ()
    %280 = vector.shape_cast %279 : vector<2x8x8xf32> to vector<16x8xf32>
    %c3_110 = arith.constant 3 : index
    %c0_111 = arith.constant 0 : index
    %c0_112 = arith.constant 0 : index
    %281 = vector.load %arg8[%c3_110, %c0_111, %c0_112] : memref<4x8x16xf32, #tpu.memory_space<vmem>>, vector<1x8x16xf32>
    %282 = vector.shape_cast %281 : vector<1x8x16xf32> to vector<8x16xf32>
    %cst_113 = arith.constant dense<0.000000e+00> : vector<16x16xf32>
    %283 = tpu.matmul %280, %282, %cst_113 {dimension_numbers = #tpu.dot_dimension_numbers<[1], [0], [0], [1], [0, 0, 1, 1], [], []>} : vector<16x8xf32>, vector<8x16xf32>, vector<16x16xf32> -> vector<16x16xf32>
    %284 = arith.addf %246, %283 : vector<16x16xf32>
    %285 = vector.broadcast %200 : vector<1x16xf32> to vector<16x16xf32>
    %286 = arith.addf %284, %285 : vector<16x16xf32>
    %287 = vector.shape_cast %286 : vector<16x16xf32> to vector<2x8x16xf32>
    %288 = arith.addf %197, %287 : vector<2x8x16xf32>
    %cst_114 = arith.constant dense<0.000000e+00> : vector<2x8xf32>
    %289 = vector.multi_reduction <add>, %288, %cst_114 [2] : vector<2x8x16xf32> to vector<2x8xf32>
    %290 = vector.shape_cast %289 : vector<2x8xf32> to vector<2x8x1xf32>
    %cst_115 = arith.constant 1.600000e+01 : f32
    %291 = vector.broadcast %cst_115 : f32 to vector<2x8x1xf32>
    %292 = arith.divf %290, %291 : vector<2x8x1xf32>
    %293 = vector.broadcast %292 : vector<2x8x1xf32> to vector<2x8x16xf32>
    %294 = arith.subf %288, %293 : vector<2x8x16xf32>
    %295 = arith.mulf %294, %294 : vector<2x8x16xf32>
    %cst_116 = arith.constant dense<0.000000e+00> : vector<2x8xf32>
    %296 = vector.multi_reduction <add>, %295, %cst_116 [2] : vector<2x8x16xf32> to vector<2x8xf32>
    %297 = vector.shape_cast %296 : vector<2x8xf32> to vector<2x8x1xf32>
    %cst_117 = arith.constant 1.600000e+01 : f32
    %298 = vector.broadcast %cst_117 : f32 to vector<2x8x1xf32>
    %299 = arith.divf %297, %298 : vector<2x8x1xf32>
    %300 = vector.broadcast %292 : vector<2x8x1xf32> to vector<2x8x16xf32>
    %301 = arith.subf %288, %300 : vector<2x8x16xf32>
    %cst_118 = arith.constant 9.99999974E-6 : f32
    %302 = vector.broadcast %cst_118 : f32 to vector<2x8x1xf32>
    %303 = arith.addf %299, %302 : vector<2x8x1xf32>
    %304 = math.rsqrt %303 : vector<2x8x1xf32>
    %305 = vector.broadcast %304 : vector<2x8x1xf32> to vector<2x8x16xf32>
    %306 = arith.mulf %301, %305 : vector<2x8x16xf32>
    %307 = vector.shape_cast %201 : vector<1x16xf32> to vector<1x1x16xf32>
    %308 = vector.broadcast %307 : vector<1x1x16xf32> to vector<2x8x16xf32>
    %309 = arith.mulf %306, %308 : vector<2x8x16xf32>
    %310 = vector.shape_cast %202 : vector<1x16xf32> to vector<1x1x16xf32>
    %311 = vector.broadcast %310 : vector<1x1x16xf32> to vector<2x8x16xf32>
    %312 = arith.addf %309, %311 : vector<2x8x16xf32>
    %313 = vector.broadcast %22 : vector<2x8x1xf32> to vector<2x8x16xf32>
    %314 = arith.mulf %312, %313 : vector<2x8x16xf32>
    %315 = vector.shape_cast %314 : vector<2x8x16xf32> to vector<16x16xf32>
    %c1_119 = arith.constant 1 : index
    %c0_120 = arith.constant 0 : index
    %c0_121 = arith.constant 0 : index
    %316 = vector.load %arg9[%c1_119, %c0_120, %c0_121] : memref<2x16x32xf32, #tpu.memory_space<vmem>>, vector<1x16x32xf32>
    %317 = vector.shape_cast %316 : vector<1x16x32xf32> to vector<16x32xf32>
    %cst_122 = arith.constant dense<0.000000e+00> : vector<16x32xf32>
    %318 = tpu.matmul %315, %317, %cst_122 {dimension_numbers = #tpu.dot_dimension_numbers<[1], [0], [0], [1], [0, 0, 1, 1], [], []>} : vector<16x16xf32>, vector<16x32xf32>, vector<16x32xf32> -> vector<16x32xf32>
    %319 = vector.broadcast %203 : vector<1x32xf32> to vector<16x32xf32>
    %320 = arith.addf %318, %319 : vector<16x32xf32>
    %cst_123 = arith.constant 0.000000e+00 : f32
    %321 = vector.broadcast %cst_123 : f32 to vector<16x32xf32>
    %322 = arith.maximumf %320, %321 : vector<16x32xf32>
    %323 = vector.shape_cast %322 : vector<16x32xf32> to vector<2x8x32xf32>
    %324 = vector.broadcast %22 : vector<2x8x1xf32> to vector<2x8x32xf32>
    %325 = arith.mulf %323, %324 : vector<2x8x32xf32>
    %326 = vector.shape_cast %325 : vector<2x8x32xf32> to vector<16x32xf32>
    %c1_124 = arith.constant 1 : index
    %c0_125 = arith.constant 0 : index
    %c0_126 = arith.constant 0 : index
    %327 = vector.load %arg10[%c1_124, %c0_125, %c0_126] : memref<2x32x16xf32, #tpu.memory_space<vmem>>, vector<1x32x16xf32>
    %328 = vector.shape_cast %327 : vector<1x32x16xf32> to vector<32x16xf32>
    %cst_127 = arith.constant dense<0.000000e+00> : vector<16x16xf32>
    %329 = tpu.matmul %326, %328, %cst_127 {dimension_numbers = #tpu.dot_dimension_numbers<[1], [0], [0], [1], [0, 0, 1, 1], [], []>} : vector<16x32xf32>, vector<32x16xf32>, vector<16x16xf32> -> vector<16x16xf32>
    %330 = vector.broadcast %204 : vector<1x16xf32> to vector<16x16xf32>
    %331 = arith.addf %329, %330 : vector<16x16xf32>
    %332 = vector.shape_cast %331 : vector<16x16xf32> to vector<2x8x16xf32>
    %333 = vector.broadcast %22 : vector<2x8x1xf32> to vector<2x8x16xf32>
    %334 = arith.mulf %332, %333 : vector<2x8x16xf32>
    %335 = arith.addf %312, %334 : vector<2x8x16xf32>
    %cst_128 = arith.constant dense<0.000000e+00> : vector<2x8xf32>
    %336 = vector.multi_reduction <add>, %335, %cst_128 [2] : vector<2x8x16xf32> to vector<2x8xf32>
    %337 = vector.shape_cast %336 : vector<2x8xf32> to vector<2x8x1xf32>
    %cst_129 = arith.constant 1.600000e+01 : f32
    %338 = vector.broadcast %cst_129 : f32 to vector<2x8x1xf32>
    %339 = arith.divf %337, %338 : vector<2x8x1xf32>
    %340 = vector.broadcast %339 : vector<2x8x1xf32> to vector<2x8x16xf32>
    %341 = arith.subf %335, %340 : vector<2x8x16xf32>
    %342 = arith.mulf %341, %341 : vector<2x8x16xf32>
    %cst_130 = arith.constant dense<0.000000e+00> : vector<2x8xf32>
    %343 = vector.multi_reduction <add>, %342, %cst_130 [2] : vector<2x8x16xf32> to vector<2x8xf32>
    %344 = vector.shape_cast %343 : vector<2x8xf32> to vector<2x8x1xf32>
    %cst_131 = arith.constant 1.600000e+01 : f32
    %345 = vector.broadcast %cst_131 : f32 to vector<2x8x1xf32>
    %346 = arith.divf %344, %345 : vector<2x8x1xf32>
    %347 = vector.broadcast %339 : vector<2x8x1xf32> to vector<2x8x16xf32>
    %348 = arith.subf %335, %347 : vector<2x8x16xf32>
    %cst_132 = arith.constant 9.99999974E-6 : f32
    %349 = vector.broadcast %cst_132 : f32 to vector<2x8x1xf32>
    %350 = arith.addf %346, %349 : vector<2x8x1xf32>
    %351 = math.rsqrt %350 : vector<2x8x1xf32>
    %352 = vector.broadcast %351 : vector<2x8x1xf32> to vector<2x8x16xf32>
    %353 = arith.mulf %348, %352 : vector<2x8x16xf32>
    %354 = vector.shape_cast %205 : vector<1x16xf32> to vector<1x1x16xf32>
    %355 = vector.broadcast %354 : vector<1x1x16xf32> to vector<2x8x16xf32>
    %356 = arith.mulf %353, %355 : vector<2x8x16xf32>
    %357 = vector.shape_cast %206 : vector<1x16xf32> to vector<1x1x16xf32>
    %358 = vector.broadcast %357 : vector<1x1x16xf32> to vector<2x8x16xf32>
    %359 = arith.addf %356, %358 : vector<2x8x16xf32>
    %360 = vector.broadcast %22 : vector<2x8x1xf32> to vector<2x8x16xf32>
    %361 = arith.mulf %359, %360 : vector<2x8x16xf32>
    %362 = vector.shape_cast %361 : vector<2x8x16xf32> to vector<16x16xf32>
    %c0_133 = arith.constant 0 : index
    %c0_134 = arith.constant 0 : index
    %363 = vector.load %arg4[%c0_133, %c0_134] : memref<16x8xf32, #tpu.memory_space<vmem>>, vector<16x8xf32>
    %cst_135 = arith.constant dense<0.000000e+00> : vector<16x8xf32>
    %364 = tpu.matmul %362, %363, %cst_135 {dimension_numbers = #tpu.dot_dimension_numbers<[1], [0], [0], [1], [0, 0, 1, 1], [], []>} : vector<16x16xf32>, vector<16x8xf32>, vector<16x8xf32> -> vector<16x8xf32>
    %365 = vector.broadcast %2 : vector<1x8xf32> to vector<16x8xf32>
    %366 = arith.addf %364, %365 : vector<16x8xf32>
    %367 = vector.shape_cast %366 : vector<16x8xf32> to vector<2x8x8xf32>
    %368 = vector.broadcast %22 : vector<2x8x1xf32> to vector<2x8x8xf32>
    %369 = arith.mulf %367, %368 : vector<2x8x8xf32>
    %370 = vector.extract_strided_slice %369 {offsets = [0, 7, 0], sizes = [2, 1, 8], strides = [1, 1, 1]} : vector<2x8x8xf32> to vector<2x1x8xf32>
    %371 = vector.shape_cast %370 : vector<2x1x8xf32> to vector<2x8xf32>
    %c0_136 = arith.constant 0 : index
    %c0_137 = arith.constant 0 : index
    %372 = vector.load %arg5[%c0_136, %c0_137] : memref<32x8xf32, #tpu.memory_space<vmem>>, vector<32x8xf32>
    %cst_138 = arith.constant dense<0.000000e+00> : vector<2x8xf32>
    %373 = tpu.matmul %15, %372, %cst_138 {dimension_numbers = #tpu.dot_dimension_numbers<[1], [0], [0], [1], [0, 0, 1, 1], [], []>} : vector<2x32xf32>, vector<32x8xf32>, vector<2x8xf32> -> vector<2x8xf32>
    %374 = vector.broadcast %3 : vector<1x8xf32> to vector<2x8xf32>
    %375 = arith.addf %373, %374 : vector<2x8xf32>
    %376 = arith.addf %375, %371 : vector<2x8xf32>
    %c0_139 = arith.constant 0 : index
    %c0_140 = arith.constant 0 : index
    %377 = vector.load %arg15[%c0_139, %c0_140] : memref<2x8xf32, #tpu.memory_space<vmem>>, vector<2x8xf32>
    tpu.vector_store %arg15[%c0_139, %c0_140], %376 {strides = array<i32>} : memref<2x8xf32, #tpu.memory_space<vmem>>, vector<2x8xf32>,
    %c0_141 = arith.constant 0 : index
    %c0_142 = arith.constant 0 : index
    %378 = vector.load %arg6[%c0_141, %c0_142] : memref<8x2xf32, #tpu.memory_space<vmem>>, vector<8x2xf32>
    %cst_143 = arith.constant dense<0.000000e+00> : vector<2x2xf32>
    %379 = tpu.matmul %376, %378, %cst_143 {dimension_numbers = #tpu.dot_dimension_numbers<[1], [0], [0], [1], [0, 0, 1, 1], [], []>} : vector<2x8xf32>, vector<8x2xf32>, vector<2x2xf32> -> vector<2x2xf32>
    %380 = vector.broadcast %4 : vector<1x2xf32> to vector<2x2xf32>
    %381 = arith.addf %379, %380 : vector<2x2xf32>
    %cst_144 = arith.constant dense<0xFF800000> : vector<2xf32>
    %382 = vector.multi_reduction <maximumf>, %381, %cst_144 [1] : vector<2x2xf32> to vector<2xf32>
    %383 = vector.shape_cast %382 : vector<2xf32> to vector<2x1xf32>
    %384 = vector.broadcast %383 : vector<2x1xf32> to vector<2x2xf32>
    %385 = arith.subf %381, %384 : vector<2x2xf32>
    %386 = math.exp %385 : vector<2x2xf32>
    %cst_145 = arith.constant dense<0.000000e+00> : vector<2xf32>
    %387 = vector.multi_reduction <add>, %386, %cst_145 [1] : vector<2x2xf32> to vector<2xf32>
    %388 = vector.shape_cast %387 : vector<2xf32> to vector<2x1xf32>
    %389 = math.log %388 : vector<2x1xf32>
    %390 = vector.broadcast %389 : vector<2x1xf32> to vector<2x2xf32>
    %391 = arith.subf %385, %390 : vector<2x2xf32>
    %c0_146 = arith.constant 0 : index
    %c0_147 = arith.constant 0 : index
    %392 = vector.load %arg13[%c0_146, %c0_147] : memref<2x2xf32, #tpu.memory_space<vmem>>, vector<2x2xf32>
    tpu.vector_store %arg13[%c0_146, %c0_147], %391 {strides = array<i32>} : memref<2x2xf32, #tpu.memory_space<vmem>>, vector<2x2xf32>,
    return
  }
}

</mosaic_0001>

<bundles_post_ra>
// kernel: model_forward.1
= control target key start
LH: loop header
LB: loop body
LE: loop exit
PB: predicated region body
PF: predicated region fallthrough
CT: control target
= control target key end

     0   :  { %21 = vsyncpa [#allocation3], 0  ;;  %v54_v0 = vlaneseq  ;;  %v4413_v2 = vmov 0   ;;  %v4414_v6 = vmov 1966171168   ;;  %v4415_v8 = vmov 0.0|0.0   ;;  %s5067_s0 = inlined_call_operand.vmem [shape: s32[2,1], index: 0, kind: input, shape index: {}]   ;;  %s5068_s1 = inlined_call_operand.vmem [shape: f32[2,4,16], index: 1, kind: input, shape index: {}]   ;;  %s5069_s2 = inlined_call_operand.vmem [shape: f32[2,8,16], index: 2, kind: input, shape index: {}]   ;;  %s5070_s3 = inlined_call_operand.vmem [shape: f32[16,32], index: 3, kind: input, shape index: {}]   ;;  %s5071_s4 = inlined_call_operand.vmem [shape: f32[16,8], index: 4, kind: input, shape index: {}]   ;;  %s5072_s5 = inlined_call_operand.vmem [shape: f32[32,8], index: 5, kind: input, shape index: {}]   ;;  %s5073_s6 = inlined_call_operand.vmem [shape: f32[8,2], index: 6, kind: input, shape index: {}]   ;;  %s5074_s7 = inlined_call_operand.vmem [shape: f32[12,16,8], index: 7, kind: input, shape index: {}]   ;;  %s5075_s8 = inlined_call_operand.vmem [shape: f32[4,8,16], index: 8, kind: input, shape index: {}]   ;;  %s5076_s9 = inlined_call_operand.vmem [shape: f32[2,16,32], index: 9, kind: input, shape index: {}]   ;;  %s5077_s10 = inlined_call_operand.vmem [shape: f32[2,32,16], index: 10, kind: input, shape index: {}]   ;;  %s5078_s11 = inlined_call_operand.vmem [shape: f32[2,16,128], index: 11, kind: input, shape index: {}]   ;;  %s5079_s12 = inlined_call_operand.vmem [shape: f32[8,128], index: 12, kind: input, shape index: {}]   ;;  %s5080_s13 = inlined_call_operand.hbm [shape: f32[2,2], index: 13, kind: output, shape index: {0}]   ;;  %s5081_s14 = inlined_call_operand.hbm [shape: f32[2,4,32], index: 14, kind: output, shape index: {1}]   ;;  %s5082_s15 = inlined_call_operand.hbm [shape: f32[2,8], index: 15, kind: output, shape index: {2}]  }
   0x1   :  { %v3702_v1 = vld.sshfl [vmem:[%s5067_s0] sm:$0x11 pattern:$0x75316420]  ;;  %4282 = vset.pattern.permute.xlu0 %v4413_v2  ;;  %v53_v4 = vld [vmem:[%s5070_s3 + $0x8] sm:$0xff]  ;;  %4288 = vset.pattern.permute.xlu1 %v4413_v2  ;;  %v167_v7 = vunpack.c.l.s4 %v4414_v6  ;;  %vm4416_vm0 = vmmov 0  }
   0x2   :  { %v52_v3 = vld [vmem:[%s5070_s3] sm:$0xff]  ;;  %v4514_v5 = vshrl.u32 %v54_v0, 7  ;;  %4182 = vmatprep.subr.bf16.mxu0 %v4415_v8  ;;  %v4417_v10 = vmov 0.0  }
   0x3   :  { %v4183_v9 = vpack.c.bf16 %v53_v4, %v52_v3  ;;  %3936 = vmatprep.mubr.msk.f32.mxu0 %vm4416_vm0, %v4417_v10  ;;  %v4289_v11 = vld [vmem:[%s5068_s1] sm:$0xff]  }
   0x4   :  { %22 = vsyncpa [#allocation5], 0  ;;  %v165_v12 = vcombine.high %v3702_v1, %v3702_v1  ;;  %v168_v13 = vunpack.c.0.s8 %v167_v7  ;;  %vm61_vm1 = vcmask 130048   ;;  %v4523_v14 = vsub.s32 0, %v4514_v5  ;;  %v228_v23 = vld [vmem:[%s5074_s7] sm:$0xff]  ;;  %v229_v24 = vld [vmem:[%s5074_s7 + $0x8] sm:$0xff] }
   0x5   :  { %4184 = vmatpush3.bf16.msra.mxu0 %v4183_v9  ;;  %v3705_v25 = vld [vmem:[%s5074_s7 + $0x20] sm:$0xff]  ;;  %v4185_v26 = vpack.c.bf16 %v229_v24, %v228_v23  ;;  %v3706_v27 = vld [vmem:[%s5074_s7 + $0x28] sm:$0xff]  ;;  %vm137_vm4 = vcmask 257024   ;;  %vm3483_vm5 = vcmask 1041409   ;;  %v4593_v62 = vsub.s32 2, %v4514_v5 }
   0x6   :  { %v171_v15 = vsub.s32 %v168_v13, %v4514_v5  ;;  %v4189_v28 = vpack.c.bf16 %v3706_v27, %v3705_v25  ;;  %v3707_v29 = vld [vmem:[%s5074_s7 + $0x40] sm:$0xff]  ;;  %v3708_v30 = vld [vmem:[%s5074_s7 + $0x48] sm:$0xff]  ;;  %v4603_v2 = vsub.s32 4, %v4514_v5  ;;  %vm479_vm6 = vcmask 64512  }
   0x7   :  { %4186 = vmatprep.subr.bf16.mxu1 %v4185_v26  ;;  %v4193_v31 = vpack.c.bf16 %v3708_v30, %v3707_v29  ;;  %v212_v33 = vld [vmem:[%s5069_s2] sm:$0xff]  ;;  %v213_v34 = vld [vmem:[%s5069_s2 + $0x8] sm:$0xff]  ;;  %v4418_v24 = vmov -10000.0   ;;  %vm1679_vm13 = vcmask 261120   ;;  %vm3564_vm14 = vcmask 58368  }
   0x8   :  { %3937 = vmatmul.mubr.msk.f32.vlgmr.msra.gmra.mrb[0].mxu0 %vm61_vm1, %v4289_v11  ;;  %v172_v16 = vrot.slane %v3702_v1, %v171_v15  ;;  %v179_v17 = vrot.slane %v165_v12, %v171_v15  ;;  %4190 = vmatprep.subr.bf16.mxu0 %v4189_v28  ;;  %v49_v39 = vld [vmem:[%s5079_s12] sm:$0xff]  ;;  %vm3644_vm15 = vcmask 9216  }
   0x9   :  { %4188 = vmatpush3.bf16.msra.mxu1 %v4185_v26  ;;  %4192 = vmatpush3.bf16.msra.mxu0 %v4189_v28  ;;  %v57_v40 = vrot.slane %v49_v39, %v4523_v14  ;;  %v4598_v63 = vld [vmem:[%s5078_s11] sm:$0xff] }
   0xa   :  { %v185_v18 = vrot.slane %v172_v16, %v4523_v14  ;;  %v189_v19 = vrot.slane %v179_v17, %v4523_v14  ;;  %3960 = vmatprep.subr.mxu0 %v4417_v10  ;;  %4194 = vmatprep.subr.bf16.mxu1 %v4193_v31  ;;  %v324_v1 = vrot.slane %v4598_v63, %v4593_v62 }
   0xb   :  { %v239_v3 = vrot.slane %v4598_v63, %v4523_v14  ;;  %v403_v12 = vrot.slane %v4598_v63, %v4603_v2 }
   0xc   :  { %vm190_vm2 = vcmp.lt.s32.totalorder %v4514_v5, %v185_v18  ;;  %vm191_vm3 = vcmp.lt.s32.totalorder %v4514_v5, %v189_v19  ;;  %199 = vperm.xlu1 %4288, %v185_v18  }
   0xd   :  { %v3703_v20 = vsel %vm190_vm2, 1.0, %v4417_v10  ;;  %v3704_v21 = vsel %vm191_vm3, 1.0, %v4417_v10 }
   0xe   :  { %v4283_v22 = vpack.i.bf16 %v3704_v21, %v3703_v20  ;;  %v197_v21 = vand.u32 127, %v54_v0 }
  0x10   :  { %4284 = vperm.xlu0 %4282, %v4283_v22  }
  0x14   :  { %202 = vperm.xlu0 %4282, %v189_v19  }
  0x8b   :  { %v200_v22 = vpop.permute.xlu1 %199 }
  0x8c   :  { %vm204_vm7 = vcmp.lt.s32.totalorder %v4514_v5, %v200_v22  ;;  %vm206_vm8 = vcmp.lt.s32.totalorder %v197_v21, %v200_v22 }
  0x8d   :  { %vm208_vm11 = vmand %vm204_vm7, %vm206_vm8 }
  0x8e   :  { %v4622_v25 = vsel %vm208_vm11, 0.0, %v4418_v24 }
  0x8f   :  { %v4285_v32 = vpop.permute.xlu0 %4284 }
  0x90   :  { %v4558_v35 = vunpack.i.h.bf16 %v4285_v32  ;;  %v4560_v36 = vunpack.i.l.bf16 %v4285_v32 }
  0x92   :  { %v4563_v37 = vmul.f32 %v4560_v36, %v212_v33  ;;  %v4566_v38 = vmul.f32 %v4558_v35, %v213_v34 }
  0x93   :  { %v203_v23 = vpop.permute.xlu0 %202 }
  0x94   :  { %3943 = vmatprep.mubr.msk.f32.mxu1 %vm61_vm1, %v4563_v37  ;;  %3950 = vmatprep.mubr.msk.f32.mxu0 %vm61_vm1, %v4563_v37  ;;  %vm205_vm9 = vcmp.lt.s32.totalorder %v4514_v5, %v203_v23  ;;  %vm207_vm10 = vcmp.lt.s32.totalorder %v197_v21, %v203_v23 }
  0x95   :  { %3944 = vmatmul.mubr.msk.f32.vlgmr.msra.gmra.mrb[0].mxu1 %vm61_vm1, %v4566_v38  ;;  %3951 = vmatmul.mubr.msk.f32.vlgmr.msra.gmra.mrb[2].mxu0 %vm61_vm1, %v4566_v38  ;;  %vm209_vm12 = vmand %vm205_vm9, %vm207_vm10 }
  0x96   :  { %4196 = vmatpush3.bf16.msra.mxu1 %v4193_v31  ;;  %3957 = vmatprep.mubr.msk.f32.mxu1 %vm61_vm1, %v4563_v37  ;;  %v4624_v26 = vsel %vm209_vm12, 0.0, %v4418_v24 }
  0x97   :  { %3965 = vmatprep.subr.mxu1 %v4417_v10  ;;  %3962 = vmatprep.mubr.msk.f32.mxu0 %vm4416_vm0, %v4417_v10 }
  0x99   :  { %3958 = vmatmul.mubr.msk.f32.vlgmr.msra.gmra.mrb[2].mxu1 %vm61_vm1, %v4566_v38 }
  0x9a   :  { %3967 = vmatprep.mubr.msk.f32.mxu1 %vm4416_vm0, %v4417_v10 }
  0xdb   :  { %v130_v41 = vpop.f32.mrb[0].mxu0 }
  0xdc   :  { %v131_v42 = vadd.f32 %v130_v41, %v57_v40  ;;  %v3938_v43 = vpop.f32.mrb[1].mxu0 }
  0xde   :  { %v135_v44 = vcombine.high %v131_v42, %v131_v42  ;;  %138 = vst.msk [vmem:[#allocation4] sm:$0xf] %vm137_vm4, %v131_v42  ;;  %v140_v45 = vsel %vm137_vm4, %v131_v42, 0.0 }
  0xdf   :  { %v141_v46 = vrot.slane %v140_v45, 4 }
  0xe0   :  { %139 = vst.msk [vmem:[#allocation4 + $0x4] sm:$0xf] %vm137_vm4, %v135_v44  ;;  %v147_v47 = vsel %vm137_vm4, %v135_v44, 0.0 }
  0xe1   :  { %v142_v48 = vadd.f32 %v141_v46, %v140_v45  ;;  %v148_v49 = vrot.slane %v147_v47, 4 }
  0xe3   :  { %v143_v50 = vrot.slane %v142_v48, 2  ;;  %v149_v51 = vadd.f32 %v148_v49, %v147_v47  ;;  %v3724_v49 = vld [vmem:[%s5074_s7 + $0x38] sm:$0xff] }
  0xe5   :  { %v144_v52 = vadd.f32 %v143_v50, %v142_v48  ;;  %v150_v53 = vrot.slane %v149_v51, 2  ;;  %v3723_v48 = vld [vmem:[%s5074_s7 + $0x30] sm:$0xff] }
  0xe6   :  { %v4201_v50 = vpack.c.bf16 %v3724_v49, %v3723_v48 }
  0xe7   :  { %v151_v54 = vadd.f32 %v150_v53, %v149_v51  ;;  %v145_v55 = vrot.slane %v144_v52, 1  ;;  %v3721_v51 = vld [vmem:[%s5074_s7 + $0x10] sm:$0xff] }
  0xe9   :  { %v152_v56 = vrot.slane %v151_v54, 1  ;;  %v146_v57 = vadd.f32 %v145_v55, %v144_v52  ;;  %v3722_v52 = vld [vmem:[%s5074_s7 + $0x18] sm:$0xff] }
  0xea   :  { %v4197_v53 = vpack.c.bf16 %v3722_v52, %v3721_v51 }
  0xeb   :  { %v153_v58 = vadd.f32 %v152_v56, %v151_v54  ;;  %v155_v59 = vmul.f32 0.25, %v146_v57  ;;  %v3725_v56 = vld [vmem:[%s5074_s7 + $0x50] sm:$0xff]  ;;  %v3726_v57 = vld [vmem:[%s5074_s7 + $0x58] sm:$0xff] }
  0xed   :  { %v156_v60 = vmul.f32 0.25, %v153_v58 }
  0xef   :  { %v4590_v61 = vsel %vm3483_vm5, %v156_v60, %v155_v59 }
 0x168   :  { %v3945_v4 = vpop.f32.mrb[0].mxu1  ;;  %v3952_v6 = vpop.f32.mrb[2].mxu0 }
 0x169   :  { %v397_v7 = vadd.f32 %v3952_v6, %v324_v1  ;;  %v312_v9 = vpop.f32.mrb[1].mxu1  ;;  %v391_v11 = vpop.f32.mrb[3].mxu0  ;;  %v318_v15 = vadd.f32 %v3945_v4, %v239_v3  ;;  %v4671_v4 = vsub.s32 3, %v4514_v5 }
 0x16a   :  { %v392_v13 = vadd.f32 %v391_v11, %v324_v1  ;;  %v313_v17 = vadd.f32 %v312_v9, %v239_v3  ;;  %v4205_v3 = vpack.c.bf16 %v3726_v57, %v3725_v56 }
 0x16b   :  { %3966 = vmatpush3.xpose.msk.msra.mxu1 %vm479_vm6, %v397_v7  ;;  %v4676_v7 = vsub.s32 1, %v4514_v5 }
 0x16c   :  { %v3959_v16 = vpop.f32.mrb[2].mxu1  ;;  %3961 = vmatpush3.xpose.msk.msra.mxu0 %vm479_vm6, %v392_v13  ;;  %3975 = vmatprep.subr.mxu1 %v4417_v10 }
 0x16d   :  { %v476_v18 = vadd.f32 %v3959_v16, %v403_v12  ;;  %v470_v19 = vpop.f32.mrb[3].mxu1  ;;  %3970 = vmatprep.subr.mxu0 %v4417_v10 }
 0x16e   :  { %v471_v20 = vadd.f32 %v470_v19, %v403_v12  ;;  %3968 = vmatmul.mubr.msk.f32.vlgmr.msra.gmra.mrb[4].mxu1 %vm479_vm6, %v318_v15  ;;  %v892_v12 = vrot.slane %v4598_v63, %v4671_v4  ;;  %v970_v15 = vsub.s32 5, %v4514_v5 }
 0x16f   :  { %3963 = vmatmul.mubr.msk.f32.vlgmr.msra.gmra.mrb[4].mxu0 %vm479_vm6, %v313_v17  ;;  %3976 = vmatpush3.msra.mxu1 %v476_v18  ;;  %v813_v17 = vrot.slane %v4598_v63, %v4676_v7 }
 0x170   :  { %3971 = vmatpush3.msra.mxu0 %v471_v20  ;;  %3977 = vmatprep.mubr.msk.f32.mxu1 %vm4416_vm0, %v4417_v10  ;;  %v971_v23 = vrot.slane %v4598_v63, %v970_v15 }
 0x171   :  { %3972 = vmatprep.mubr.msk.f32.mxu0 %vm4416_vm0, %v4417_v10  ;;  %4202 = vmatprep.subr.bf16.mxu1 %v4201_v50 }
 0x172   :  { %4198 = vmatprep.subr.bf16.mxu0 %v4197_v53 }
 0x241   :  { %v628_v27 = vpop.f32.mrb[4].mxu1 }
 0x242   :  { %v629_v28 = vadd.f32 %v628_v27, %v4624_v26  ;;  %v552_v29 = vpop.f32.mrb[4].mxu0  ;;  %v3969_v0 = vpop.f32.mrb[5].mxu1 }
 0x243   :  { %v553_v30 = vadd.f32 %v552_v29, %v4622_v25  ;;  %v3964_v31 = vpop.f32.mrb[5].mxu0 }
 0x244   :  { %v635_v32 = vsel %vm479_vm6, %v629_v28, -inf }
 0x245   :  { %636 = vmax.xlane.f32.xlu1 %v635_v32  ;;  %v632_v33 = vsel %vm479_vm6, %v553_v30, -inf }
 0x246   :  { %633 = vmax.xlane.f32.xlu0 %v632_v33 }
 0x2d2   :  { %v637_v34 = vpop.xlane.xlu1 %636 }
 0x2d3   :  { %v639_v39 = vsub.f32 %v629_v28, %v637_v34  ;;  %v634_v40 = vpop.xlane.xlu0 %633 }
 0x2d4   :  { %v638_v41 = vsub.f32 %v553_v30, %v634_v40 }
 0x2d5   :  { %v642_v42 = vmul.f32 1.442695, %v639_v39 }
 0x2d6   :  { %v640_v43 = vmul.f32 1.442695, %v638_v41 }
 0x2d7   :  { %4290 = vpow2.f32 %v642_v42 }
 0x2d8   :  { %4292 = vpow2.f32 %v640_v43 }
 0x2e1   :  { %v4291_v44 = vpop.eup %4290 }
 0x2e2   :  { %v4293_v45 = vpop.eup %4292  ;;  %v647_v46 = vsel %vm479_vm6, %v4291_v44, 0.0 }
 0x2e3   :  { %648 = vadd.xlane.f32.xlu0 %v647_v46  ;;  %v644_v47 = vsel %vm479_vm6, %v4293_v45, 0.0 }
 0x2e4   :  { %645 = vadd.xlane.f32.xlu1 %v644_v47 }
 0x370   :  { %v649_v54 = vpop.xlane.xlu0 %648 }
 0x371   :  { %4294 = vrcp.f32 %v649_v54  ;;  %v646_v55 = vpop.xlane.xlu1 %645 }
 0x372   :  { %4296 = vrcp.f32 %v646_v55 }
 0x37b   :  { %v4295_v58 = vpop.eup %4294 }
 0x37c   :  { %v4297_v59 = vpop.eup %4296  ;;  %v653_v60 = vmul.f32 %v4295_v58, %v4291_v44 }
 0x37d   :  { %v651_v1 = vmul.f32 %v4297_v59, %v4293_v45 }
 0x37e   :  { %3978 = vmatmul.mubr.msk.f32.vlgmr.msra.gmra.mrb[6].mxu1 %vm479_vm6, %v653_v60  ;;  %v800_v60 = vld [vmem:[%s5075_s8] sm:$0xff] }
 0x37f   :  { %3973 = vmatmul.mubr.msk.f32.vlgmr.msra.gmra.mrb[6].mxu0 %vm479_vm6, %v651_v1  ;;  %4204 = vmatpush3.bf16.msra.mxu1 %v4201_v50 }
 0x380   :  { %3991 = vmatprep.mubr.msk.f32.mxu1 %vm61_vm1, %v4563_v37  ;;  %4200 = vmatpush3.bf16.msra.mxu0 %v4197_v53  ;;  %v3739_v53 = vld [vmem:[%s5075_s8 + $0x8] sm:$0xff] }
 0x381   :  { %3984 = vmatprep.mubr.msk.f32.mxu0 %vm61_vm1, %v4563_v37  ;;  %4206 = vmatprep.subr.bf16.mxu0 %v4205_v3 }
 0x382   :  { %3992 = vmatmul.mubr.msk.f32.vlgmr.msra.gmra.mrb[8].mxu1 %vm61_vm1, %v4566_v38  ;;  %4001 = vmatprep.subr.mxu1 %v4417_v10 }
 0x383   :  { %3985 = vmatmul.mubr.msk.f32.vlgmr.msra.gmra.mrb[8].mxu0 %vm61_vm1, %v4566_v38  ;;  %4003 = vmatprep.mubr.msk.f32.mxu1 %vm4416_vm0, %v4417_v10 }
 0x384   :  { %4208 = vmatpush3.bf16.msra.mxu0 %v4205_v3  ;;  %3998 = vmatprep.mubr.msk.f32.mxu0 %vm61_vm1, %v4563_v37 }
 0x385   :  { %4006 = vmatprep.subr.mxu0 %v4417_v10 }
 0x387   :  { %3999 = vmatmul.mubr.msk.f32.vlgmr.msra.gmra.mrb[10].mxu0 %vm61_vm1, %v4566_v38 }
 0x388   :  { %4008 = vmatprep.mubr.msk.f32.mxu0 %vm4416_vm0, %v4417_v10 }
 0x451   :  { %v4673_v6 = vpop.f32.mrb[6].mxu1 }
 0x452   :  { %v4678_v9 = vpop.f32.mrb[6].mxu0  ;;  %v3979_v11 = vpop.f32.mrb[7].mxu1 }
 0x453   :  { %v3974_v13 = vpop.f32.mrb[7].mxu0 }
 0x454   :  { %v1533_v13 = vsub.s32 6, %v4514_v5 }
 0x455   :  { %v3993_v16 = vpop.f32.mrb[8].mxu1 }
 0x456   :  { %v965_v18 = vadd.f32 %v3993_v16, %v892_v12  ;;  %v3986_v19 = vpop.f32.mrb[8].mxu0  ;;  %v959_v20 = vpop.f32.mrb[9].mxu1  ;;  %v1534_v16 = vrot.slane %v4598_v63, %v1533_v13 }
 0x457   :  { %v960_v21 = vadd.f32 %v959_v20, %v892_v12  ;;  %v880_v22 = vpop.f32.mrb[9].mxu0  ;;  %v886_v24 = vadd.f32 %v3986_v19, %v813_v17 }
 0x458   :  { %4007 = vmatpush3.xpose.msk.msra.mxu0 %vm479_vm6, %v965_v18  ;;  %v881_v27 = vadd.f32 %v880_v22, %v813_v17 }
 0x459   :  { %4002 = vmatpush3.xpose.msk.msra.mxu1 %vm479_vm6, %v960_v21  ;;  %4016 = vmatprep.subr.mxu0 %v4417_v10 }
 0x45a   :  { %v4000_v28 = vpop.f32.mrb[10].mxu0  ;;  %4011 = vmatprep.subr.mxu1 %v4417_v10 }
 0x45b   :  { %v1044_v29 = vadd.f32 %v4000_v28, %v971_v23  ;;  %v1038_v0 = vpop.f32.mrb[11].mxu0  ;;  %4009 = vmatmul.mubr.msk.f32.vlgmr.msra.gmra.mrb[12].mxu0 %vm479_vm6, %v886_v24 }
 0x45c   :  { %v1039_v30 = vadd.f32 %v1038_v0, %v971_v23  ;;  %4004 = vmatmul.mubr.msk.f32.vlgmr.msra.gmra.mrb[10].mxu1 %vm479_vm6, %v881_v27  ;;  %4018 = vmatprep.mubr.msk.f32.mxu0 %vm4416_vm0, %v4417_v10 }
 0x45d   :  { %4017 = vmatpush3.msra.mxu0 %v1044_v29  ;;  %4013 = vmatprep.mubr.msk.f32.mxu1 %vm4416_vm0, %v4417_v10 }
 0x45e   :  { %4012 = vmatpush3.msra.mxu1 %v1039_v30 }
 0x45f   :  { %4021 = vmatprep.subr.mxu1 %v3739_v53 }
 0x52e   :  { %v1195_v31 = vpop.f32.mrb[12].mxu0 }
 0x52f   :  { %v1196_v32 = vadd.f32 %v1195_v31, %v4624_v26  ;;  %v1119_v33 = vpop.f32.mrb[10].mxu1  ;;  %v4010_v34 = vpop.f32.mrb[13].mxu0 }
 0x530   :  { %v1120_v39 = vadd.f32 %v1119_v33, %v4622_v25  ;;  %v4005_v40 = vpop.f32.mrb[11].mxu1  ;;  %v1581_v33 = vld [vmem:[%s5076_s9 + $0x8] sm:$0xff] }
 0x531   :  { %v1202_v41 = vsel %vm479_vm6, %v1196_v32, -inf }
 0x532   :  { %1203 = vmax.xlane.f32.xlu1 %v1202_v41  ;;  %v1199_v42 = vsel %vm479_vm6, %v1120_v39, -inf }
 0x533   :  { %1200 = vmax.xlane.f32.xlu0 %v1199_v42 }
 0x5bf   :  { %v1204_v43 = vpop.xlane.xlu1 %1203 }
 0x5c0   :  { %v1206_v44 = vsub.f32 %v1196_v32, %v1204_v43  ;;  %v1201_v45 = vpop.xlane.xlu0 %1200 }
 0x5c1   :  { %v1205_v46 = vsub.f32 %v1120_v39, %v1201_v45  ;;  %v1568_v45 = vsub.s32 7, %v4514_v5  ;;  %v3796_v5 = vld [vmem:[%s5077_s10 + $0x20] sm:$0xff] }
 0x5c2   :  { %v1209_v47 = vmul.f32 1.442695, %v1206_v44 }
 0x5c3   :  { %v1207_v48 = vmul.f32 1.442695, %v1205_v46  ;;  %v4738_v46 = vld [vmem:[%s5078_s11 + $0x8] sm:$0xff] }
 0x5c4   :  { %4298 = vpow2.f32 %v1209_v47  ;;  %v1569_v47 = vrot.slane %v4598_v63, %v1568_v45  ;;  %v1671_v63 = vld [vmem:[%s5077_s10] sm:$0xff] }
 0x5c5   :  { %4300 = vpow2.f32 %v1207_v48 }
 0x5ce   :  { %v4299_v49 = vpop.eup %4298 }
 0x5cf   :  { %v4301_v50 = vpop.eup %4300  ;;  %v1214_v51 = vsel %vm479_vm6, %v4299_v49, 0.0 }
 0x5d0   :  { %1215 = vadd.xlane.f32.xlu1 %v1214_v51  ;;  %v1211_v52 = vsel %vm479_vm6, %v4301_v50, 0.0  ;;  %v1575_v51 = vrot.slane %v4738_v46, %v4523_v14 }
 0x5d1   :  { %1212 = vadd.xlane.f32.xlu0 %v1211_v52 }
 0x65d   :  { %v1216_v54 = vpop.xlane.xlu1 %1215 }
 0x65e   :  { %4302 = vrcp.f32 %v1216_v54  ;;  %v1213_v55 = vpop.xlane.xlu0 %1212 }
 0x65f   :  { %4304 = vrcp.f32 %v1213_v55 }
 0x668   :  { %v4303_v56 = vpop.eup %4302 }
 0x669   :  { %v4305_v57 = vpop.eup %4304  ;;  %v1220_v58 = vmul.f32 %v4303_v56, %v4299_v49 }
 0x66a   :  { %v1218_v59 = vmul.f32 %v4305_v57, %v4301_v50 }
 0x66b   :  { %4019 = vmatmul.mubr.msk.f32.vlgmr.msra.gmra.mrb[14].mxu0 %vm479_vm6, %v1220_v58 }
 0x66c   :  { %4014 = vmatmul.mubr.msk.f32.vlgmr.msra.gmra.mrb[12].mxu1 %vm479_vm6, %v1218_v59  ;;  %v1672_v59 = vld [vmem:[%s5077_s10 + $0x8] sm:$0xff] }
 0x66d   :  { %4022 = vmatpush3.msra.mxu1 %v3739_v53 }
 0x66e   :  { %4026 = vmatprep.subr.mxu1 %v800_v60 }
 0x73e   :  { %v1363_v1 = vpop.f32.mrb[14].mxu0 }
 0x73f   :  { %v1290_v3 = vpop.f32.mrb[12].mxu1  ;;  %v4020_v11 = vpop.f32.mrb[15].mxu0 }
 0x740   :  { %v4015_v12 = vpop.f32.mrb[13].mxu1  ;;  %4023 = vmatprep.mubr.msk.f32.mxu1 %vm479_vm6, %v1290_v3  ;;  %v1674_v3 = vld [vmem:[%s5077_s10 + $0x18] sm:$0xff] }
 0x741   :  { %4024 = vmatmul.mubr.msk.f32.vlgmr.msra.gmra.mrb[14].mxu1 %vm479_vm6, %v1363_v1  ;;  %v1673_v1 = vld [vmem:[%s5077_s10 + $0x10] sm:$0xff]  ;;  %v1585_v12 = vrot.slane %v4738_v46, %v4676_v7 }
 0x742   :  { %4027 = vmatpush3.msra.mxu1 %v800_v60  ;;  %4028 = vmatprep.mubr.msk.f32.mxu1 %vm479_vm6, %v4678_v9  ;;  %v4213_v60 = vpack.c.bf16 %v1672_v59, %v1671_v63  ;;  %v4217_v11 = vpack.c.bf16 %v1674_v3, %v1673_v1  ;;  %v1794_v3 = vrot.slane %v4738_v46, %v4671_v4 }
 0x749   :  { %4029 = vmatmul.mubr.msk.f32.vlgmr.msra.gmra.mrb[14].mxu1 %vm479_vm6, %v4673_v6 }
 0x81c   :  { %v4030_v17 = vpop.f32.mrb[14].mxu1 }
 0x81d   :  { %v1536_v18 = vadd.f32 %v4030_v17, %v1534_v16  ;;  %v1522_v19 = vpop.f32.mrb[15].mxu1 }
 0x81e   :  { %v1535_v20 = vadd.f32 %v1534_v16, %v1522_v19 }
 0x81f   :  { %v1538_v21 = vadd.f32 %v1536_v18, %v4566_v38 }
 0x820   :  { %v1537_v22 = vadd.f32 %v1535_v20, %v4563_v37  ;;  %v1580_v37 = vld [vmem:[%s5076_s9] sm:$0xff] }
 0x821   :  { %v1542_v23 = vsel %vm61_vm1, %v1538_v21, 0.0  ;;  %v4209_v34 = vpack.c.bf16 %v1581_v33, %v1580_v37 }
 0x822   :  { %1543 = vadd.xlane.f32.xlu1 %v1542_v23  ;;  %v1539_v9 = vsel %vm61_vm1, %v1537_v22, 0.0 }
 0x823   :  { %1540 = vadd.xlane.f32.xlu0 %v1539_v9  ;;  %4210 = vmatprep.subr.bf16.mxu0 %v4209_v34  ;;  %v1678_v9 = vrot.slane %v4738_v46, %v4593_v62 }
 0x824   :  { %4212 = vmatpush3.bf16.msra.mxu0 %v4209_v34 }
 0x825   :  { %4214 = vmatprep.subr.bf16.mxu0 %v4213_v60 }
 0x8af   :  { %v1544_v6 = vpop.xlane.xlu1 %1543 }
 0x8b0   :  { %v1547_v24 = vmul.f32 0.0625, %v1544_v6  ;;  %v1541_v27 = vpop.xlane.xlu0 %1540 }
 0x8b1   :  { %v1546_v28 = vmul.f32 0.0625, %v1541_v27 }
 0x8b2   :  { %v1549_v29 = vsub.f32 %v1538_v21, %v1547_v24 }
 0x8b3   :  { %v1548_v0 = vsub.f32 %v1537_v22, %v1546_v28 }
 0x8b4   :  { %v1551_v30 = vmul.f32 %v1549_v29, %v1549_v29 }
 0x8b5   :  { %v1550_v31 = vmul.f32 %v1548_v0, %v1548_v0 }
 0x8b6   :  { %v1555_v32 = vsel %vm61_vm1, %v1551_v30, 0.0 }
 0x8b7   :  { %1556 = vadd.xlane.f32.xlu1 %v1555_v32  ;;  %v1552_v38 = vsel %vm61_vm1, %v1550_v31, 0.0 }
 0x8b8   :  { %1553 = vadd.xlane.f32.xlu0 %v1552_v38 }
 0x944   :  { %v1557_v39 = vpop.xlane.xlu1 %1556 }
 0x945   :  { %v1559_v40 = vmul.f32 0.0625, %v1557_v39  ;;  %v1554_v41 = vpop.xlane.xlu0 %1553 }
 0x946   :  { %v1558_v42 = vmul.f32 0.0625, %v1554_v41 }
 0x947   :  { %v1561_v43 = vadd.f32 1e-05, %v1559_v40 }
 0x948   :  { %v1560_v44 = vadd.f32 1e-05, %v1558_v42 }
 0x949   :  { %4306 = vrsqrt.f32 %v1561_v43 }
 0x94a   :  { %4308 = vrsqrt.f32 %v1560_v44 }
 0x953   :  { %v4307_v48 = vpop.eup %4306 }
 0x954   :  { %v4309_v49 = vpop.eup %4308  ;;  %v1565_v50 = vmul.f32 %v4307_v48, %v1549_v29  ;;  %v3750_v48 = vld [vmem:[%s5074_s7 + $0x60] sm:$0xff] }
 0x955   :  { %v1564_v52 = vmul.f32 %v4309_v49, %v1548_v0  ;;  %v3751_v49 = vld [vmem:[%s5074_s7 + $0x68] sm:$0xff] }
 0x956   :  { %v1571_v53 = vmul.f32 %v1569_v47, %v1565_v50  ;;  %v3754_v50 = vld [vmem:[%s5074_s7 + $0xa0] sm:$0xff] }
 0x957   :  { %v1570_v54 = vmul.f32 %v1569_v47, %v1564_v52  ;;  %v3755_v52 = vld [vmem:[%s5074_s7 + $0xa8] sm:$0xff] }
 0x958   :  { %v1577_v55 = vadd.f32 %v1575_v51, %v1571_v53  ;;  %v4229_v53 = vpack.c.bf16 %v3755_v52, %v3754_v50 }
 0x959   :  { %v1576_v56 = vadd.f32 %v1575_v51, %v1570_v54  ;;  %v4221_v51 = vpack.c.bf16 %v3751_v49, %v3750_v48  ;;  %v3752_v54 = vld [vmem:[%s5074_s7 + $0x80] sm:$0xff] }
 0x95a   :  { %v1579_v58 = vmul.f32 %v4558_v35, %v1577_v55 }
 0x95b   :  { %v1578_v57 = vmul.f32 %v4560_v36, %v1576_v56  ;;  %4222 = vmatprep.subr.bf16.mxu1 %v4221_v51 }
 0x95c   :  { %4224 = vmatpush3.bf16.msra.mxu1 %v4221_v51 }
 0x95d   :  { %4035 = vmatprep.mubr.msk.f32.mxu0 %vm61_vm1, %v1578_v57 }
 0x95e   :  { %4036 = vmatmul.mubr.msk.f32.vlgmr.msra.gmra.mrb[16].mxu0 %vm61_vm1, %v1579_v58 }
 0x95f   :  { %4216 = vmatpush3.bf16.msra.mxu0 %v4213_v60 }
 0x960   :  { %4218 = vmatprep.subr.bf16.mxu0 %v4217_v11 }
 0x963   :  { %4220 = vmatpush3.bf16.msra.mxu0 %v4217_v11 }
 0x964   :  { %4230 = vmatprep.subr.bf16.mxu0 %v4229_v53 }
 0xa31   :  { %v4037_v16 = vpop.f32.mrb[16].mxu0 }
 0xa32   :  { %v1664_v17 = vadd.f32 %v4037_v16, %v1585_v12  ;;  %v1658_v18 = vpop.f32.mrb[17].mxu0 }
 0xa33   :  { %v1659_v19 = vadd.f32 %v1658_v18, %v1585_v12 }
 0xa34   :  { %v1668_v20 = vmax.f32 %v1664_v17, 0.0  ;;  %v1800_v17 = vrot.slane %v4738_v46, %v4603_v2  ;;  %v4822_v46 = vld [vmem:[%s5078_s11 + $0x10] sm:$0xff] }
 0xa35   :  { %v1667_v21 = vmax.f32 %v1659_v19, 0.0 }
 0xa36   :  { %v1670_v23 = vmul.f32 %v4558_v35, %v1668_v20 }
 0xa37   :  { %v1669_v22 = vmul.f32 %v4560_v36, %v1667_v21 }
 0xa39   :  { %4046 = vmatprep.mubr.msk.f32.mxu0 %vm1679_vm13, %v1669_v22 }
 0xa3a   :  { %4047 = vmatmul.mubr.msk.f32.vlgmr.msra.gmra.mrb[18].mxu0 %vm1679_vm13, %v1670_v23 }
 0xa3b   :  { %4232 = vmatpush3.bf16.msra.mxu0 %v4229_v53 }
 0xa3c   :  { %4075 = vmatprep.subr.mxu0 %v4417_v10 }
 0xb0d   :  { %v4048_v6 = vpop.f32.mrb[18].mxu0 }
 0xb0e   :  { %v1758_v24 = vadd.f32 %v4048_v6, %v1678_v9  ;;  %v1752_v27 = vpop.f32.mrb[19].mxu0 }
 0xb0f   :  { %v1753_v28 = vadd.f32 %v1752_v27, %v1678_v9  ;;  %v1903_v27 = vrot.slane %v4822_v46, %v4593_v62 }
 0xb10   :  { %v1762_v29 = vmul.f32 %v4558_v35, %v1758_v24 }
 0xb11   :  { %v1761_v0 = vmul.f32 %v4560_v36, %v1753_v28  ;;  %v1818_v28 = vrot.slane %v4822_v46, %v4523_v14 }
 0xb12   :  { %v1764_v30 = vadd.f32 %v1762_v29, %v1577_v55  ;;  %v3753_v55 = vld [vmem:[%s5074_s7 + $0x88] sm:$0xff] }
 0xb13   :  { %v1763_v31 = vadd.f32 %v1761_v0, %v1576_v56  ;;  %v4225_v56 = vpack.c.bf16 %v3753_v55, %v3752_v54  ;;  %v1982_v0 = vrot.slane %v4822_v46, %v4603_v2 }
 0xb14   :  { %v1768_v32 = vsel %vm61_vm1, %v1764_v30, 0.0 }
 0xb15   :  { %1769 = vadd.xlane.f32.xlu1 %v1768_v32  ;;  %v1765_v38 = vsel %vm61_vm1, %v1763_v31, 0.0  ;;  %4226 = vmatprep.subr.bf16.mxu1 %v4225_v56 }
 0xb16   :  { %1766 = vadd.xlane.f32.xlu0 %v1765_v38 }
 0xba2   :  { %v1770_v37 = vpop.xlane.xlu1 %1769 }
 0xba3   :  { %v1772_v33 = vmul.f32 0.0625, %v1770_v37  ;;  %v1767_v34 = vpop.xlane.xlu0 %1766 }
 0xba4   :  { %v1771_v39 = vmul.f32 0.0625, %v1767_v34 }
 0xba5   :  { %v1774_v40 = vsub.f32 %v1764_v30, %v1772_v33 }
 0xba6   :  { %v1773_v41 = vsub.f32 %v1763_v31, %v1771_v39 }
 0xba7   :  { %v1776_v42 = vmul.f32 %v1774_v40, %v1774_v40 }
 0xba8   :  { %v1775_v43 = vmul.f32 %v1773_v41, %v1773_v41 }
 0xba9   :  { %v1780_v44 = vsel %vm61_vm1, %v1776_v42, 0.0 }
 0xbaa   :  { %1781 = vadd.xlane.f32.xlu1 %v1780_v44  ;;  %v1777_v47 = vsel %vm61_vm1, %v1775_v43, 0.0 }
 0xbab   :  { %1778 = vadd.xlane.f32.xlu0 %v1777_v47 }
 0xc37   :  { %v1782_v57 = vpop.xlane.xlu1 %1781 }
 0xc38   :  { %v1784_v58 = vmul.f32 0.0625, %v1782_v57  ;;  %v1779_v63 = vpop.xlane.xlu0 %1778 }
 0xc39   :  { %v1783_v59 = vmul.f32 0.0625, %v1779_v63  ;;  %v3771_v63 = vld [vmem:[%s5074_s7 + $0x90] sm:$0xff] }
 0xc3a   :  { %v1786_v60 = vadd.f32 1e-05, %v1784_v58 }
 0xc3b   :  { %v1785_v1 = vadd.f32 1e-05, %v1783_v59  ;;  %v3772_v59 = vld [vmem:[%s5074_s7 + $0x98] sm:$0xff] }
 0xc3c   :  { %4310 = vrsqrt.f32 %v1786_v60  ;;  %v4237_v60 = vpack.c.bf16 %v3772_v59, %v3771_v63 }
 0xc3d   :  { %4312 = vrsqrt.f32 %v1785_v1  ;;  %v3769_v1 = vld [vmem:[%s5074_s7 + $0x70] sm:$0xff] }
 0xc46   :  { %v4311_v11 = vpop.eup %4310 }
 0xc47   :  { %v4313_v12 = vpop.eup %4312  ;;  %v1790_v16 = vmul.f32 %v4311_v11, %v1774_v40 }
 0xc48   :  { %v1789_v18 = vmul.f32 %v4313_v12, %v1773_v41 }
 0xc49   :  { %v1796_v19 = vmul.f32 %v1794_v3, %v1790_v16 }
 0xc4a   :  { %v1795_v20 = vmul.f32 %v1794_v3, %v1789_v18  ;;  %v3770_v3 = vld [vmem:[%s5074_s7 + $0x78] sm:$0xff] }
 0xc4b   :  { %v4800_v22 = vadd.f32 %v1800_v17, %v1796_v19  ;;  %v4233_v11 = vpack.c.bf16 %v3770_v3, %v3769_v1  ;;  %v3774_v18 = vld [vmem:[%s5074_s7 + $0xb8] sm:$0xff] }
 0xc4c   :  { %v4798_v21 = vadd.f32 %v1800_v17, %v1795_v20  ;;  %v3773_v17 = vld [vmem:[%s5074_s7 + $0xb0] sm:$0xff]  ;;  %v3787_v3 = vld [vmem:[%s5075_s8 + $0x18] sm:$0xff] }
 0xc4e   :  { %4053 = vmatprep.mubr.msk.f32.mxu1 %vm61_vm1, %v4798_v21  ;;  %4067 = vmatprep.mubr.msk.f32.mxu0 %vm61_vm1, %v4798_v21 }
 0xc4f   :  { %4054 = vmatmul.mubr.msk.f32.vlgmr.msra.gmra.mrb[16].mxu1 %vm61_vm1, %v4800_v22  ;;  %4068 = vmatmul.mubr.msk.f32.vlgmr.msra.gmra.mrb[20].mxu0 %vm61_vm1, %v4800_v22 }
 0xc50   :  { %4228 = vmatpush3.bf16.msra.mxu1 %v4225_v56  ;;  %4060 = vmatprep.mubr.msk.f32.mxu1 %vm61_vm1, %v4798_v21 }
 0xc51   :  { %4070 = vmatprep.subr.mxu1 %v4417_v10  ;;  %4077 = vmatprep.mubr.msk.f32.mxu0 %vm4416_vm0, %v4417_v10 }
 0xc53   :  { %4061 = vmatmul.mubr.msk.f32.vlgmr.msra.gmra.mrb[18].mxu1 %vm61_vm1, %v4800_v22 }
 0xc54   :  { %4072 = vmatprep.mubr.msk.f32.mxu1 %vm4416_vm0, %v4417_v10 }
 0xd22   :  { %v4055_v23 = vpop.f32.mrb[16].mxu1  ;;  %v4069_v9 = vpop.f32.mrb[20].mxu0 }
 0xd23   :  { %v1891_v6 = vpop.f32.mrb[17].mxu1  ;;  %v2049_v24 = vpop.f32.mrb[21].mxu0  ;;  %v1897_v38 = vadd.f32 %v4055_v23, %v1818_v28  ;;  %v2055_v37 = vadd.f32 %v4069_v9, %v1982_v0 }
 0xd24   :  { %v1892_v33 = vadd.f32 %v1891_v6, %v1818_v28  ;;  %v2050_v34 = vadd.f32 %v2049_v24, %v1982_v0  ;;  %v4241_v6 = vpack.c.bf16 %v3774_v18, %v3773_v17 }
 0xd26   :  { %v4062_v29 = vpop.f32.mrb[18].mxu1 }
 0xd27   :  { %v1976_v30 = vadd.f32 %v4062_v29, %v1903_v27  ;;  %v1970_v31 = vpop.f32.mrb[19].mxu1  ;;  %v2471_v29 = vrot.slane %v4822_v46, %v4671_v4 }
 0xd28   :  { %v1971_v32 = vadd.f32 %v1970_v31, %v1903_v27  ;;  %v2392_v31 = vrot.slane %v4822_v46, %v4676_v7 }
 0xd29   :  { %4076 = vmatpush3.xpose.msk.msra.mxu0 %vm479_vm6, %v1976_v30 }
 0xd2a   :  { %4071 = vmatpush3.xpose.msk.msra.mxu1 %vm479_vm6, %v1971_v32  ;;  %4085 = vmatprep.subr.mxu0 %v4417_v10 }
 0xd2b   :  { %4080 = vmatprep.subr.mxu1 %v4417_v10 }
 0xd2c   :  { %4078 = vmatmul.mubr.msk.f32.vlgmr.msra.gmra.mrb[22].mxu0 %vm479_vm6, %v1897_v38 }
 0xd2d   :  { %4073 = vmatmul.mubr.msk.f32.vlgmr.msra.gmra.mrb[20].mxu1 %vm479_vm6, %v1892_v33  ;;  %4086 = vmatpush3.msra.mxu0 %v2055_v37 }
 0xd2e   :  { %4081 = vmatpush3.msra.mxu1 %v2050_v34  ;;  %4087 = vmatprep.mubr.msk.f32.mxu0 %vm4416_vm0, %v4417_v10 }
 0xd2f   :  { %4082 = vmatprep.mubr.msk.f32.mxu1 %vm4416_vm0, %v4417_v10  ;;  %4238 = vmatprep.subr.bf16.mxu0 %v4237_v60 }
 0xd30   :  { %4234 = vmatprep.subr.bf16.mxu1 %v4233_v11 }
 0xdff   :  { %v2206_v39 = vpop.f32.mrb[22].mxu0 }
 0xe00   :  { %v2207_v40 = vadd.f32 %v2206_v39, %v4624_v26  ;;  %v2130_v41 = vpop.f32.mrb[20].mxu1  ;;  %v4079_v42 = vpop.f32.mrb[23].mxu0  ;;  %v2550_v39 = vrot.slane %v4822_v46, %v970_v15 }
 0xe01   :  { %v2131_v43 = vadd.f32 %v2130_v41, %v4622_v25  ;;  %v4074_v44 = vpop.f32.mrb[21].mxu1 }
 0xe02   :  { %v2213_v47 = vsel %vm479_vm6, %v2207_v40, -inf }
 0xe03   :  { %2214 = vmax.xlane.f32.xlu0 %v2213_v47  ;;  %v2210_v48 = vsel %vm479_vm6, %v2131_v43, -inf }
 0xe04   :  { %2211 = vmax.xlane.f32.xlu1 %v2210_v48 }
 0xe90   :  { %v2215_v49 = vpop.xlane.xlu0 %2214 }
 0xe91   :  { %v2217_v50 = vsub.f32 %v2207_v40, %v2215_v49  ;;  %v2212_v51 = vpop.xlane.xlu1 %2211 }
 0xe92   :  { %v2216_v52 = vsub.f32 %v2131_v43, %v2212_v51 }
 0xe93   :  { %v2220_v53 = vmul.f32 1.442695, %v2217_v50 }
 0xe94   :  { %v2218_v54 = vmul.f32 1.442695, %v2216_v52 }
 0xe95   :  { %4314 = vpow2.f32 %v2220_v53 }
 0xe96   :  { %4316 = vpow2.f32 %v2218_v54 }
 0xe9f   :  { %v4315_v55 = vpop.eup %4314 }
 0xea0   :  { %v4317_v56 = vpop.eup %4316  ;;  %v2225_v57 = vsel %vm479_vm6, %v4315_v55, 0.0 }
 0xea1   :  { %2226 = vadd.xlane.f32.xlu0 %v2225_v57  ;;  %v2222_v58 = vsel %vm479_vm6, %v4317_v56, 0.0 }
 0xea2   :  { %2223 = vadd.xlane.f32.xlu1 %v2222_v58 }
 0xf2e   :  { %v2227_v12 = vpop.xlane.xlu0 %2226 }
 0xf2f   :  { %4318 = vrcp.f32 %v2227_v12  ;;  %v2224_v16 = vpop.xlane.xlu1 %2223 }
 0xf30   :  { %4320 = vrcp.f32 %v2224_v16 }
 0xf39   :  { %v4319_v19 = vpop.eup %4318 }
 0xf3a   :  { %v4321_v20 = vpop.eup %4320  ;;  %v2231_v23 = vmul.f32 %v4319_v19, %v4315_v55 }
 0xf3b   :  { %v2229_v9 = vmul.f32 %v4321_v20, %v4317_v56  ;;  %v3768_v20 = vld [vmem:[%s5075_s8 + $0x10] sm:$0xff] }
 0xf3c   :  { %4088 = vmatmul.mubr.msk.f32.vlgmr.msra.gmra.mrb[24].mxu0 %vm479_vm6, %v2231_v23 }
 0xf3d   :  { %4083 = vmatmul.mubr.msk.f32.vlgmr.msra.gmra.mrb[22].mxu1 %vm479_vm6, %v2229_v9  ;;  %4240 = vmatpush3.bf16.msra.mxu0 %v4237_v60 }
 0xf3e   :  { %4101 = vmatprep.mubr.msk.f32.mxu0 %vm61_vm1, %v4798_v21  ;;  %4236 = vmatpush3.bf16.msra.mxu1 %v4233_v11 }
 0xf3f   :  { %4094 = vmatprep.mubr.msk.f32.mxu1 %vm61_vm1, %v4798_v21  ;;  %4242 = vmatprep.subr.bf16.mxu1 %v4241_v6 }
 0xf40   :  { %4102 = vmatmul.mubr.msk.f32.vlgmr.msra.gmra.mrb[26].mxu0 %vm61_vm1, %v4800_v22  ;;  %4111 = vmatprep.subr.mxu0 %v4417_v10 }
 0xf41   :  { %4095 = vmatmul.mubr.msk.f32.vlgmr.msra.gmra.mrb[24].mxu1 %vm61_vm1, %v4800_v22  ;;  %4113 = vmatprep.mubr.msk.f32.mxu0 %vm4416_vm0, %v4417_v10 }
 0xf42   :  { %4244 = vmatpush3.bf16.msra.mxu1 %v4241_v6  ;;  %4108 = vmatprep.mubr.msk.f32.mxu1 %vm61_vm1, %v4798_v21 }
 0xf43   :  { %4116 = vmatprep.subr.mxu1 %v4417_v10 }
 0xf45   :  { %4109 = vmatmul.mubr.msk.f32.vlgmr.msra.gmra.mrb[26].mxu1 %vm61_vm1, %v4800_v22 }
 0xf46   :  { %4118 = vmatprep.mubr.msk.f32.mxu1 %vm4416_vm0, %v4417_v10 }
0x100f   :  { %v4884_v24 = vpop.f32.mrb[24].mxu0 }
0x1010   :  { %v4886_v27 = vpop.f32.mrb[22].mxu1  ;;  %v4089_v28 = vpop.f32.mrb[25].mxu0 }
0x1011   :  { %v4084_v0 = vpop.f32.mrb[23].mxu1 }
0x1013   :  { %v4103_v30 = vpop.f32.mrb[26].mxu0 }
0x1014   :  { %v2544_v32 = vadd.f32 %v4103_v30, %v2471_v29  ;;  %v4096_v38 = vpop.f32.mrb[24].mxu1  ;;  %v2538_v37 = vpop.f32.mrb[27].mxu0 }
0x1015   :  { %v2539_v33 = vadd.f32 %v2538_v37, %v2471_v29  ;;  %v2459_v34 = vpop.f32.mrb[25].mxu1  ;;  %v2465_v40 = vadd.f32 %v4096_v38, %v2392_v31  ;;  %v3113_v29 = vrot.slane %v4822_v46, %v1533_v13 }
0x1016   :  { %4117 = vmatpush3.xpose.msk.msra.mxu1 %vm479_vm6, %v2544_v32  ;;  %v2460_v41 = vadd.f32 %v2459_v34, %v2392_v31 }
0x1017   :  { %4112 = vmatpush3.xpose.msk.msra.mxu0 %vm479_vm6, %v2539_v33  ;;  %4126 = vmatprep.subr.mxu1 %v4417_v10 }
0x1018   :  { %v4110_v42 = vpop.f32.mrb[26].mxu1  ;;  %4121 = vmatprep.subr.mxu0 %v4417_v10 }
0x1019   :  { %v2623_v43 = vadd.f32 %v4110_v42, %v2550_v39  ;;  %v2617_v44 = vpop.f32.mrb[27].mxu1  ;;  %4119 = vmatmul.mubr.msk.f32.vlgmr.msra.gmra.mrb[28].mxu1 %vm479_vm6, %v2465_v40 }
0x101a   :  { %v2618_v47 = vadd.f32 %v2617_v44, %v2550_v39  ;;  %4114 = vmatmul.mubr.msk.f32.vlgmr.msra.gmra.mrb[28].mxu0 %vm479_vm6, %v2460_v41  ;;  %4128 = vmatprep.mubr.msk.f32.mxu1 %vm4416_vm0, %v4417_v10 }
0x101b   :  { %4127 = vmatpush3.msra.mxu1 %v2623_v43  ;;  %4123 = vmatprep.mubr.msk.f32.mxu0 %vm4416_vm0, %v4417_v10 }
0x101c   :  { %4122 = vmatpush3.msra.mxu0 %v2618_v47  ;;  %v3793_v47 = vld [vmem:[%s5076_s9 + $0x18] sm:$0xff] }
0x101d   :  { %4131 = vmatprep.subr.mxu0 %v3787_v3 }
0x10ec   :  { %v2774_v15 = vpop.f32.mrb[28].mxu1 }
0x10ed   :  { %v2775_v48 = vadd.f32 %v2774_v15, %v4624_v26  ;;  %v2698_v49 = vpop.f32.mrb[28].mxu0  ;;  %v4120_v50 = vpop.f32.mrb[29].mxu1 }
0x10ee   :  { %v2699_v51 = vadd.f32 %v2698_v49, %v4622_v25  ;;  %v4115_v52 = vpop.f32.mrb[29].mxu0 }
0x10ef   :  { %v2781_v53 = vsel %vm479_vm6, %v2775_v48, -inf }
0x10f0   :  { %2782 = vmax.xlane.f32.xlu1 %v2781_v53  ;;  %v2778_v54 = vsel %vm479_vm6, %v2699_v51, -inf }
0x10f1   :  { %2779 = vmax.xlane.f32.xlu0 %v2778_v54  ;;  %v4943_v54 = vld [vmem:[%s5078_s11 + $0x18] sm:$0xff] }
0x117d   :  { %v2783_v55 = vpop.xlane.xlu1 %2782 }
0x117e   :  { %v2785_v56 = vsub.f32 %v2775_v48, %v2783_v55  ;;  %v2780_v57 = vpop.xlane.xlu0 %2779  ;;  %v3147_v55 = vrot.slane %v4822_v46, %v1568_v45  ;;  %v3798_v46 = vld [vmem:[%s5077_s10 + $0x30] sm:$0xff] }
0x117f   :  { %v2784_v58 = vsub.f32 %v2699_v51, %v2780_v57 }
0x1180   :  { %v2788_v63 = vmul.f32 1.442695, %v2785_v56 }
0x1181   :  { %v2786_v59 = vmul.f32 1.442695, %v2784_v58 }
0x1182   :  { %4322 = vpow2.f32 %v2788_v63  ;;  %v3153_v63 = vrot.slane %v4943_v54, %v4523_v14  ;;  %v3797_v14 = vld [vmem:[%s5077_s10 + $0x28] sm:$0xff] }
0x1183   :  { %4324 = vpow2.f32 %v2786_v59  ;;  %v4249_v45 = vpack.c.bf16 %v3797_v14, %v3796_v5  ;;  %v3473_v5 = vld [vmem:[%s5072_s5] sm:$0xff]  ;;  %v3474_v14 = vld [vmem:[%s5072_s5 + $0x8] sm:$0xff] }
0x118c   :  { %v4323_v26 = vpop.eup %4322 }
0x118d   :  { %v4325_v60 = vpop.eup %4324  ;;  %v2793_v1 = vsel %vm479_vm6, %v4323_v26, 0.0 }
0x118e   :  { %2794 = vadd.xlane.f32.xlu1 %v2793_v1  ;;  %v2790_v25 = vsel %vm479_vm6, %v4325_v60, 0.0 }
0x118f   :  { %2791 = vadd.xlane.f32.xlu0 %v2790_v25 }
0x121b   :  { %v2795_v11 = vpop.xlane.xlu1 %2794 }
0x121c   :  { %4326 = vrcp.f32 %v2795_v11  ;;  %v2792_v12 = vpop.xlane.xlu0 %2791 }
0x121d   :  { %4328 = vrcp.f32 %v2792_v12  ;;  %v3799_v12 = vld [vmem:[%s5077_s10 + $0x38] sm:$0xff] }
0x1226   :  { %v4327_v16 = vpop.eup %4326 }
0x1227   :  { %v4329_v17 = vpop.eup %4328  ;;  %v2799_v18 = vmul.f32 %v4327_v16, %v4323_v26  ;;  %v4253_v16 = vpack.c.bf16 %v3799_v12, %v3798_v46  ;;  %v4262_v12 = vpack.c.bf16 %v3474_v14, %v3473_v5 }
0x1228   :  { %v2797_v19 = vmul.f32 %v4329_v17, %v4325_v60  ;;  %v3164_v17 = vrot.slane %v4943_v54, %v4676_v7 }
0x1229   :  { %4129 = vmatmul.mubr.msk.f32.vlgmr.msra.gmra.mrb[30].mxu1 %vm479_vm6, %v2799_v18 }
0x122a   :  { %4124 = vmatmul.mubr.msk.f32.vlgmr.msra.gmra.mrb[30].mxu0 %vm479_vm6, %v2797_v19 }
0x122b   :  { %4132 = vmatpush3.msra.mxu0 %v3787_v3 }
0x122c   :  { %4136 = vmatprep.subr.mxu0 %v3768_v20 }
0x12fc   :  { %v2942_v23 = vpop.f32.mrb[30].mxu1 }
0x12fd   :  { %v2869_v9 = vpop.f32.mrb[30].mxu0  ;;  %v4130_v6 = vpop.f32.mrb[31].mxu1 }
0x12fe   :  { %v4125_v28 = vpop.f32.mrb[31].mxu0  ;;  %4133 = vmatprep.mubr.msk.f32.mxu0 %vm479_vm6, %v2869_v9 }
0x12ff   :  { %4134 = vmatmul.mubr.msk.f32.vlgmr.msra.gmra.mrb[32].mxu0 %vm479_vm6, %v2942_v23 }
0x1300   :  { %4137 = vmatpush3.msra.mxu0 %v3768_v20  ;;  %4138 = vmatprep.mubr.msk.f32.mxu0 %vm479_vm6, %v4886_v27 }
0x1307   :  { %4139 = vmatmul.mubr.msk.f32.vlgmr.msra.gmra.mrb[32].mxu0 %vm479_vm6, %v4884_v24 }
0x13da   :  { %v4140_v0 = vpop.f32.mrb[32].mxu0 }
0x13db   :  { %v3115_v30 = vadd.f32 %v4140_v0, %v3113_v29  ;;  %v3101_v31 = vpop.f32.mrb[33].mxu0  ;;  %v3258_v0 = vrot.slane %v4943_v54, %v4593_v62 }
0x13dc   :  { %v3114_v32 = vadd.f32 %v3113_v29, %v3101_v31 }
0x13dd   :  { %v3117_v38 = vadd.f32 %v3115_v30, %v4800_v22 }
0x13de   :  { %v3116_v37 = vadd.f32 %v3114_v32, %v4798_v21  ;;  %v3792_v21 = vld [vmem:[%s5076_s9 + $0x10] sm:$0xff] }
0x13df   :  { %v3121_v33 = vsel %vm61_vm1, %v3117_v38, 0.0  ;;  %v4245_v15 = vpack.c.bf16 %v3793_v47, %v3792_v21 }
0x13e0   :  { %3122 = vadd.xlane.f32.xlu1 %v3121_v33  ;;  %v3118_v27 = vsel %vm61_vm1, %v3116_v37, 0.0 }
0x13e1   :  { %3119 = vadd.xlane.f32.xlu0 %v3118_v27  ;;  %4246 = vmatprep.subr.bf16.mxu1 %v4245_v15 }
0x13e2   :  { %4248 = vmatpush3.bf16.msra.mxu1 %v4245_v15 }
0x13e3   :  { %4250 = vmatprep.subr.bf16.mxu1 %v4249_v45 }
0x146d   :  { %v3123_v34 = vpop.xlane.xlu1 %3122 }
0x146e   :  { %v3125_v24 = vmul.f32 0.0625, %v3123_v34  ;;  %v3120_v39 = vpop.xlane.xlu0 %3119 }
0x146f   :  { %v3124_v40 = vmul.f32 0.0625, %v3120_v39 }
0x1470   :  { %v3127_v41 = vsub.f32 %v3117_v38, %v3125_v24 }
0x1471   :  { %v3126_v13 = vsub.f32 %v3116_v37, %v3124_v40 }
0x1472   :  { %v3129_v42 = vmul.f32 %v3127_v41, %v3127_v41 }
0x1473   :  { %v3128_v43 = vmul.f32 %v3126_v13, %v3126_v13 }
0x1474   :  { %v3133_v44 = vsel %vm61_vm1, %v3129_v42, 0.0 }
0x1475   :  { %3134 = vadd.xlane.f32.xlu1 %v3133_v44  ;;  %v3130_v22 = vsel %vm61_vm1, %v3128_v43, 0.0 }
0x1476   :  { %3131 = vadd.xlane.f32.xlu0 %v3130_v22 }
0x1502   :  { %v3135_v48 = vpop.xlane.xlu1 %3134 }
0x1503   :  { %v3137_v49 = vmul.f32 0.0625, %v3135_v48  ;;  %v3132_v50 = vpop.xlane.xlu0 %3131  ;;  %v3384_v48 = vld [vmem:[%s5071_s4] sm:$0xff] }
0x1504   :  { %v3136_v51 = vmul.f32 0.0625, %v3132_v50 }
0x1505   :  { %v3139_v52 = vadd.f32 1e-05, %v3137_v49  ;;  %v3385_v49 = vld [vmem:[%s5071_s4 + $0x8] sm:$0xff] }
0x1506   :  { %v3138_v53 = vadd.f32 1e-05, %v3136_v51  ;;  %v4257_v50 = vpack.c.bf16 %v3385_v49, %v3384_v48 }
0x1507   :  { %4330 = vrsqrt.f32 %v3139_v52 }
0x1508   :  { %4332 = vrsqrt.f32 %v3138_v53  ;;  %4258 = vmatprep.subr.bf16.mxu0 %v4257_v50 }
0x1509   :  { %4260 = vmatpush3.bf16.msra.mxu0 %v4257_v50 }
0x150a   :  { %4261 = vmatprep.subr.bf16.mxu0 %v4415_v8 }
0x1511   :  { %v4331_v56 = vpop.eup %4330 }
0x1512   :  { %v4333_v57 = vpop.eup %4332  ;;  %v3143_v58 = vmul.f32 %v4331_v56, %v3127_v41 }
0x1513   :  { %v3142_v59 = vmul.f32 %v4333_v57, %v3126_v13 }
0x1514   :  { %v3149_v26 = vmul.f32 %v3147_v55, %v3143_v58  ;;  %v3373_v58 = vrot.slane %v4943_v54, %v4671_v4 }
0x1515   :  { %v3148_v60 = vmul.f32 %v3147_v55, %v3142_v59 }
0x1516   :  { %v3155_v1 = vadd.f32 %v3153_v63, %v3149_v26 }
0x1517   :  { %v3154_v25 = vadd.f32 %v3153_v63, %v3148_v60  ;;  %v3379_v60 = vrot.slane %v4943_v54, %v4603_v2  ;;  %v3475_v2 = vld [vmem:[%s5072_s5 + $0x10] sm:$0xff]  ;;  %v3476_v54 = vld [vmem:[%s5072_s5 + $0x18] sm:$0xff] }
0x1518   :  { %v3157_v11 = vmul.f32 %v4558_v35, %v3155_v1 }
0x1519   :  { %v3156_v3 = vmul.f32 %v4560_v36, %v3154_v25 }
0x151b   :  { %4145 = vmatprep.mubr.msk.f32.mxu1 %vm61_vm1, %v3156_v3 }
0x151c   :  { %4146 = vmatmul.mubr.msk.f32.vlgmr.msra.gmra.mrb[32].mxu1 %vm61_vm1, %v3157_v11 }
0x151d   :  { %4252 = vmatpush3.bf16.msra.mxu1 %v4249_v45 }
0x151e   :  { %4254 = vmatprep.subr.bf16.mxu1 %v4253_v16 }
0x1521   :  { %4256 = vmatpush3.bf16.msra.mxu1 %v4253_v16 }
0x1522   :  { %4177 = vmatprep.subr.mxu1 %v4417_v10 }
0x15ef   :  { %v4147_v18 = vpop.f32.mrb[32].mxu1 }
0x15f0   :  { %v3243_v19 = vadd.f32 %v4147_v18, %v3164_v17  ;;  %v3237_v20 = vpop.f32.mrb[33].mxu1  ;;  %v3566_v18 = vld [vmem:[%s5073_s6] sm:$0xff]  ;;  %s4419_s6 = smov [#allocation4]  }
0x15f1   :  { %v3238_v23 = vadd.f32 %v3237_v20, %v3164_v17  ;;  %v4265_v17 = vpack.c.bf16 %v3476_v54, %v3475_v2 }
0x15f2   :  { %v3247_v9 = vmax.f32 %v3243_v19, 0.0  ;;  %v4342_v19 = vld [vmem:[%s5079_s12] sm:$0xff]  ;;  %s3673_s12 = sshll.u32 %s4419_s6, 4  ;;  %s3674_s12 = int_to_ptr.vmem [resolvable:$true] %s3673_s12 }
0x15f3   :  { %v3246_v6 = vmax.f32 %v3238_v23, 0.0  ;;  %v3389_v20 = vrot.slane %v4342_v19, %v4676_v7  ;;  %v3570_v7 = vrot.slane %v4342_v19, %v4671_v4  ;;  %s4343_s29 = scalar_lea.vmem %s3674_s12, 128  ;;  %p4348_p1 = scmp.lt.s32.totalorder %s3674_s12, %s3674_s12 }
0x15f4   :  { %v3249_v29 = vmul.f32 %v4558_v35, %v3247_v9  ;;  %p4344_p0 = scmp.ne.s32.totalorder %s3674_s12, %s4343_s29  ;;  %p4349_p2 = scmp.lt.s32.totalorder %s4343_s29, %s4343_s29 }
0x15f5   :  { %v3248_v28 = vmul.f32 %v4560_v36, %v3246_v6 }
0x15f6   :  { %p4350_p3 = por %p4349_p2, %p4348_p1 }
0x15f7   :  { %4156 = vmatprep.mubr.msk.f32.mxu1 %vm1679_vm13, %v3248_v28 }
0x15f8   :  { %4157 = vmatmul.mubr.msk.f32.vlgmr.msra.gmra.mrb[34].mxu1 %vm1679_vm13, %v3249_v29  ;;  %v3480_v29 = vrot.slane %v4342_v19, %v4593_v62  ;;  %p4351_p4 = pnand %p4350_p3, %p4344_p0 }
0x15f9   :  { %4179 = vmatprep.mubr.msk.f32.mxu1 %vm4416_vm0, %v4417_v10  ;;  %4178 = vmatpush3.msra.mxu1 %v3566_v18 }
0x16cb   :  { %v4158_v30 = vpop.f32.mrb[34].mxu1 }
0x16cc   :  { %v3337_v31 = vadd.f32 %v4158_v30, %v3258_v0  ;;  %v3331_v32 = vpop.f32.mrb[35].mxu1 }
0x16cd   :  { %v3332_v38 = vadd.f32 %v3331_v32, %v3258_v0 }
0x16ce   :  { %v3341_v37 = vmul.f32 %v4558_v35, %v3337_v31 }
0x16cf   :  { %v3340_v33 = vmul.f32 %v4560_v36, %v3332_v38 }
0x16d0   :  { %v3343_v27 = vadd.f32 %v3341_v37, %v3155_v1 }
0x16d1   :  { %v3342_v34 = vadd.f32 %v3340_v33, %v3154_v25 }
0x16d2   :  { %v3347_v24 = vsel %vm61_vm1, %v3343_v27, 0.0 }
0x16d3   :  { %3348 = vadd.xlane.f32.xlu1 %v3347_v24  ;;  %v3344_v39 = vsel %vm61_vm1, %v3342_v34, 0.0 }
0x16d4   :  { %3345 = vadd.xlane.f32.xlu0 %v3344_v39 }
0x1760   :  { %v3349_v40 = vpop.xlane.xlu1 %3348 }
0x1761   :  { %v3351_v41 = vmul.f32 0.0625, %v3349_v40  ;;  %v3346_v13 = vpop.xlane.xlu0 %3345 }
0x1762   :  { %v3350_v42 = vmul.f32 0.0625, %v3346_v13 }
0x1763   :  { %v3353_v43 = vsub.f32 %v3343_v27, %v3351_v41 }
0x1764   :  { %v3352_v44 = vsub.f32 %v3342_v34, %v3350_v42 }
0x1765   :  { %v3355_v22 = vmul.f32 %v3353_v43, %v3353_v43 }
0x1766   :  { %v3354_v21 = vmul.f32 %v3352_v44, %v3352_v44 }
0x1767   :  { %v3359_v47 = vsel %vm61_vm1, %v3355_v22, 0.0 }
0x1768   :  { %3360 = vadd.xlane.f32.xlu1 %v3359_v47  ;;  %v3356_v15 = vsel %vm61_vm1, %v3354_v21, 0.0 }
0x1769   :  { %3357 = vadd.xlane.f32.xlu0 %v3356_v15 }
0x17f5   :  { %v3361_v51 = vpop.xlane.xlu1 %3360 }
0x17f6   :  { %v3363_v52 = vmul.f32 0.0625, %v3361_v51  ;;  %v3358_v53 = vpop.xlane.xlu0 %3357 }
0x17f7   :  { %v3362_v55 = vmul.f32 0.0625, %v3358_v53 }
0x17f8   :  { %v3365_v56 = vadd.f32 1e-05, %v3363_v52 }
0x17f9   :  { %v3364_v57 = vadd.f32 1e-05, %v3362_v55 }
0x17fa   :  { %4334 = vrsqrt.f32 %v3365_v56 }
0x17fb   :  { %4336 = vrsqrt.f32 %v3364_v57 }
0x1804   :  { %v4335_v63 = vpop.eup %4334 }
0x1805   :  { %v4337_v59 = vpop.eup %4336  ;;  %v3369_v26 = vmul.f32 %v4335_v63, %v3353_v43 }
0x1806   :  { %v3368_v1 = vmul.f32 %v4337_v59, %v3352_v44 }
0x1807   :  { %v3375_v25 = vmul.f32 %v3373_v58, %v3369_v26 }
0x1808   :  { %v3374_v3 = vmul.f32 %v3373_v58, %v3368_v1 }
0x1809   :  { %v3381_v11 = vadd.f32 %v3379_v60, %v3375_v25 }
0x180a   :  { %v3380_v45 = vadd.f32 %v3379_v60, %v3374_v3 }
0x180b   :  { %v3383_v16 = vmul.f32 %v4558_v35, %v3381_v11 }
0x180c   :  { %v3382_v46 = vmul.f32 %v4560_v36, %v3380_v45 }
0x180e   :  { %4163 = vmatprep.mubr.msk.f32.mxu0 %vm61_vm1, %v3382_v46 }
0x180f   :  { %4164 = vmatmul.mubr.msk.f32.vlgmr.msra.gmra.mrb[34].mxu0 %vm61_vm1, %v3383_v16 }
0x1810   :  { %4263 = vmatpush3.bf16.msra.mxu0 %v4262_v12  ;;  %4174 = vmatprep.mubr.msk.f32.mxu0 %vm4416_vm0, %v4417_v10 }
0x1811   :  { %4264 = vmatprep.subr.bf16.mxu0 %v4415_v8 }
0x1814   :  { %4266 = vmatpush3.bf16.msra.mxu0 %v4265_v17 }
0x1817   :  { %4175 = vmatmul.mubr.msk.f32.vlgmr.msra.gmra.mrb[36].mxu0 %vm1679_vm13, %v4590_v61 }
0x18e2   :  { %v4165_v23 = vpop.f32.mrb[34].mxu0 }
0x18e3   :  { %v3468_v9 = vadd.f32 %v4165_v23, %v3389_v20  ;;  %v3462_v10 = vpop.f32.mrb[35].mxu0 }
0x18e4   :  { %v3463_v6 = vadd.f32 %v3462_v10, %v3389_v20 }
0x18e5   :  { %v3472_v8 = vmul.f32 %v4558_v35, %v3468_v9 }
0x18e6   :  { %v3471_v28 = vmul.f32 %v4560_v36, %v3463_v6 }
0x18e7   :  { %v3560_v61 = vrot.slane %v3472_v8, 6 }
0x18e8   :  { %v3559_v0 = vrot.slane %v3471_v28, 7 }
0x18ea   :  { %v3553_v30 = vpop.f32.mrb[36].mxu0  ;;  %v3561_v31 = vsel %vm3483_vm5, %v3560_v61, %v3559_v0 }
0x18eb   :  { %v3554_v32 = vadd.f32 %v3553_v30, %v3480_v29  ;;  %v4176_v38 = vpop.f32.mrb[37].mxu0 }
0x18ed   :  { %v3563_v37 = vadd.f32 %v3561_v31, %v3554_v32 }
0x18ef   :  { %4180 = vmatmul.mubr.msk.f32.vlgmr.msra.gmra.mrb[36].mxu1 %vm479_vm6, %v3563_v37  ;;  %3565 = vst.msk [vmem:[#allocation6] sm:$0x3] %vm3564_vm14, %v3563_v37 }
0x19c2   :  { %v3640_v33 = vpop.f32.mrb[36].mxu1 }
0x19c3   :  { %v3641_v35 = vadd.f32 %v3640_v33, %v3570_v7  ;;  %v4181_v36 = vpop.f32.mrb[37].mxu1 }
0x19c5   :  { %v3645_v27 = vsel %vm3644_vm15, %v3641_v35, -inf }
0x19c6   :  { %3646 = vmax.xlane.f32.xlu0 %v3645_v27 }
0x1a53   :  { %v3647_v62 = vpop.xlane.xlu0 %3646 }
0x1a54   :  { %v3648_v34 = vsub.f32 %v3641_v35, %v3647_v62 }
0x1a56   :  { %v3649_v24 = vmul.f32 1.442695, %v3648_v34 }
0x1a58   :  { %4338 = vpow2.f32 %v3649_v24 }
0x1a62   :  { %v4339_v39 = vpop.eup %4338 }
0x1a63   :  { %v3651_v40 = vsel %vm3644_vm15, %v4339_v39, 0.0 }
0x1a64   :  { %3652 = vadd.xlane.f32.xlu1 %v3651_v40 }
0x1a65   :  { %4354 = shalt.err (!%p4351_p4)
}
0x1a66   :  { %s4355_s11 = scalar_lea.hbm %s5081_s14, 128 }
0x1a67   :  { %p4356_p5 = scmp.ne.s32.totalorder %s5081_s14, %s4355_s11  ;;  %p4359_p6 = scmp.lt.u32.totalorder %s4355_s11, %s5081_s14 }
0x1a69   :  { %p4361_p7 = pnand %p4359_p6, %p4356_p5 }
0x1a6b   :  { %4364 = shalt.err (!%p4361_p7)
}
0x1a6c   :  { %s4420_s20 = smov 64   ;;  %s4421_s21 = smov 4  }
0x1a6d   :  { %3679 = dma.vmem_to_hbm [thread:$0]  %s3674_s12, 128, %s5081_s14, [#allocation5], %s4420_s20, %s4420_s20, %s4421_s21  }
0x1a6e   :  { %s4422_s23 = smov [#allocation6]  }
0x1a6f   :  { %s3686_s2 = sshll.u32 %s4422_s23, 4  ;;  %s3687_s2 = int_to_ptr.vmem [resolvable:$true] %s3686_s2 }
0x1a70   :  { %s4365_s4 = scalar_lea.vmem %s3687_s2, 32  ;;  %p4370_p9 = scmp.lt.s32.totalorder %s3687_s2, %s3687_s2 }
0x1a71   :  { %p4366_p8 = scmp.ne.s32.totalorder %s3687_s2, %s4365_s4  ;;  %p4371_p10 = scmp.lt.s32.totalorder %s4365_s4, %s4365_s4 }
0x1a73   :  { %p4372_p11 = por %p4371_p10, %p4370_p9 }
0x1a75   :  { %p4373_p12 = pnand %p4372_p11, %p4366_p8 }
0x1a77   :  { %4376 = shalt.err (!%p4373_p12)
}
0x1a78   :  { %s4377_s7 = scalar_lea.hbm %s5082_s15, 32 }
0x1a79   :  { %p4378_p13 = scmp.ne.s32.totalorder %s5082_s15, %s4377_s7  ;;  %p4381_p0 = scmp.lt.u32.totalorder %s4377_s7, %s5082_s15 }
0x1a7b   :  { %p4383_p1 = pnand %p4381_p0, %p4378_p13 }
0x1a7d   :  { %4386 = shalt.err (!%p4383_p1)
}
0x1a7e   :  { %3689 = dma.vmem_to_hbm [thread:$0]  %s3687_s2, 32, %s5082_s15, [#allocation5]  }
0x1a7f   :  { %s4423_s27 = smov [#allocation2]  }
0x1a80   :  { %s3664_s5 = sshll.u32 %s4423_s27, 4  ;;  %s3665_s5 = int_to_ptr.vmem [resolvable:$true] %s3664_s5 }
0x1a81   :  { %s4387_s28 = scalar_lea.vmem %s3665_s5, 32  ;;  %p4392_p3 = scmp.lt.s32.totalorder %s3665_s5, %s3665_s5 }
0x1a82   :  { %p4388_p2 = scmp.ne.s32.totalorder %s3665_s5, %s4387_s28  ;;  %p4393_p4 = scmp.lt.s32.totalorder %s4387_s28, %s4387_s28 }
0x1a84   :  { %p4394_p5 = por %p4393_p4, %p4392_p3 }
0x1a86   :  { %p4395_p6 = pnand %p4394_p5, %p4388_p2 }
0x1af1   :  { %v3653_v4 = vpop.xlane.xlu1 %3652 }
0x1af2   :  { %4340 = vlog2.f32 %v3653_v4 }
0x1afc   :  { %v4341_v41 = vpop.eup %4340 }
0x1afd   :  { %v3655_v13 = vmul.f32 0.6931472, %v4341_v41 }
0x1aff   :  { %v3656_v42 = vsub.f32 %v3648_v34, %v3655_v13 }
0x1b01   :  { %3657 = vst.msk [vmem:[#allocation2] sm:$0x3] %vm3644_vm15, %v3656_v42 }
0x1b02   :  { %4398 = shalt.err (!%p4395_p6)
}
0x1b03   :  { %s4399_s15 = scalar_lea.hbm %s5080_s13, 32 }
0x1b04   :  { %p4400_p7 = scmp.ne.s32.totalorder %s5080_s13, %s4399_s15  ;;  %p4403_p8 = scmp.lt.u32.totalorder %s4399_s15, %s5080_s13 }
0x1b06   :  { %p4405_p9 = pnand %p4403_p8, %p4400_p7 }
0x1b08   :  { %4408 = shalt.err (!%p4405_p9)
}
0x1b09   :  { %3667 = dma.vmem_to_hbm [thread:$0]  %s3665_s5, 32, %s5080_s13, [#allocation3]  }
0x1b0a   :  { %4409 = dma.done.wait [#allocation3], 32  }
0x1b0b   :  { %4410 = vsyncadd [#allocation3], 4294967264 }
0x1b0c   :  { %4411 = dma.done.wait [#allocation5], 160  }
0x1b0d   :  { %4412 = vsyncadd [#allocation5], 4294967136 }
0x1b0e   :  { %3699 = vsyncpa [#allocation3], 1 }
0x1b0f   :  { %3700 = vsyncpa [#allocation5], 1 }

</bundles_post_ra>
